<compile_context>
chip_gen: v7x
topology: tpu7x:2x2x1
jax: 0.10.0
libtpu: 0.0.40
codegen_flags: <defaults>
</compile_context>

<pallas_src>
import jax
import jax.numpy as jnp
from jax import lax
from jax.experimental import pallas as pl
from jax.experimental.pallas import tpu as pltpu

NUM_CLASSES = 4
EFF_C = 1280     # EfficientNet-B0 feature channels
VIT_C = 768      # ViT-base hidden size


def _round_up(x, m):
    return (x + m - 1) // m * m


def ensemble_head_kernel(eff_ref, vit_ref, w_eff_ref, w_vit_ref, b_ref, out_ref):
    # eff_ref   : (TN, HW*1280) bf16   -- flattened eff feature map (flatten done in wrapper)
    # vit_ref   : (TN, 768)     bf16
    # w_eff_ref : (C, HW*1280)  bf16   -- fc eff-weight tiled along HW, pre-scaled by 1/HW
    #                                     (AdaptiveAvgPool2d folded into the MXU dot)
    # w_vit_ref : (C, 768)      bf16
    # b_ref     : (C, 1)        f32
    # out_ref   : (C, TN)       f32    -- batch tile on the lane axis (lane-dense stores)
    #
    # concat([pool(eff), vit]) @ W^T  ==  W_eff_tiled @ eff_flat^T + W_vit @ vit^T
    # Both dots contract on the K axis of each operand (no explicit transpose), f32
    # accumulation on the MXU; zero VPU work besides the bias add.
    logits_t = lax.dot_general(
        w_eff_ref[...], eff_ref[...],
        dimension_numbers=(((1,), (1,)), ((), ())),
        preferred_element_type=jnp.float32)                       # (C, TN)
    logits_t = logits_t + lax.dot_general(
        w_vit_ref[...], vit_ref[...],
        dimension_numbers=(((1,), (1,)), ((), ())),
        preferred_element_type=jnp.float32)
    out_ref[...] = (logits_t + b_ref[...]).astype(out_ref.dtype)  # bias bcast (C,1)


def _select_tn(n, hw, eff_budget_bytes):
    """Batch tile from a double-buffered bf16 eff-tile VMEM budget."""
    row_bytes = hw * EFF_C * 2                      # bf16 bytes per batch row of eff
    cap = max(8, eff_budget_bytes // (2 * row_bytes))
    if n <= min(cap, 128):
        # Single tile: block dims equal the full array dims, so no (8,128) divisibility
        # requirement and no batch padding of the dominant eff tensor.
        return n
    # Multi-tile: the lane-dense (C, tn) output block requires tn % 128 == 0.
    if cap >= 256 and n > 256:
        return 256   # bigger tiles amortize per-step overhead on v5e/v6e
    return 128
    # TODO(synk): for very large HW (cap < 128) add an inner "arbitrary" HW grid axis
    # with a (C, tn) f32 VMEM accumulator instead of shrinking tn.


def ensemble_head(eff_map, vit_cls, w_eff, w_vit, bias, *, eff_vmem_budget=32 << 20):
    """Fused AdaptiveAvgPool2d((1,1)) + concat + fc.

    eff_map : (N, HW, 1280)  (bf16 preferred; cast skipped if already bf16)
    vit_cls : (N, 768)
    w_eff   : (C, 1280) f32   w_vit : (C, 768) f32   (PyTorch fc.weight split)
    bias    : (C,) f32
    Returns (N, C) f32 logits.
    """
    N, HW, ce = eff_map.shape
    assert ce == EFF_C
    C = bias.shape[0]
    K_EFF = HW * EFF_C

    # Flatten (N, HW, 1280) -> (N, HW*1280): row-major reshape, no data movement.
    eff_flat = eff_map.reshape(N, K_EFF)
    # In production the backbone should emit bf16 so these casts are no-ops / fused.
    eff_flat = eff_flat.astype(jnp.bfloat16)
    vit_bf = vit_cls.astype(jnp.bfloat16)

    # Fold the pool into the fc weight: tile (w_eff / HW) along HW so one MXU dot over
    # K = HW*1280 performs pool + fc with no f32 temporary and no VPU reduction.
    w_eff_tiled = jnp.tile(w_eff * (1.0 / HW), (1, HW)).astype(jnp.bfloat16)   # (C, HW*1280)
    w_vit_bf = w_vit.astype(jnp.bfloat16)
    b2 = bias.reshape(C, 1).astype(jnp.float32)

    tn = _select_tn(N, HW, eff_vmem_budget)
    n_pad = _round_up(N, tn)
    if n_pad != N:
        # Only hit on the multi-tile path with ragged N; padded rows produce bias-only
        # logits and are sliced off below.  (For large N prefer N % 128 == 0 upstream.)
        eff_flat = jnp.pad(eff_flat, ((0, n_pad - N), (0, 0)))
        vit_bf = jnp.pad(vit_bf, ((0, n_pad - N), (0, 0)))

    # Explicit scoped-VMEM limit: double-buffered eff + vit + out tiles, resident weights.
    need = (2 * (tn * K_EFF * 2 + tn * VIT_C * 2 + C * tn * 4)
            + C * (K_EFF + VIT_C) * 2 + C * 4)
    vmem_limit = int(min(max(need + (4 << 20), 32 << 20), 56 << 20))

    grid = (n_pad // tn,)
    out_t = pl.pallas_call(
        ensemble_head_kernel,
        out_shape=jax.ShapeDtypeStruct((C, n_pad), jnp.float32),
        grid=grid,
        in_specs=[
            pl.BlockSpec((tn, K_EFF), lambda i: (i, 0)),    # streamed per batch tile (dominant)
            pl.BlockSpec((tn, VIT_C), lambda i: (i, 0)),    # streamed per batch tile
            pl.BlockSpec((C, K_EFF), lambda i: (0, 0)),     # resident tiled eff weight
            pl.BlockSpec((C, VIT_C), lambda i: (0, 0)),     # resident vit weight
            pl.BlockSpec((C, 1), lambda i: (0, 0)),         # resident bias
        ],
        out_specs=pl.BlockSpec((C, tn), lambda i: (0, i)),  # batch tile on lane axis
        compiler_params=pltpu.CompilerParams(
            dimension_semantics=("parallel",),              # megacore-shardable when grid > 1
            vmem_limit_bytes=vmem_limit,
        ),
    )(eff_flat, vit_bf, w_eff_tiled, w_vit_bf, b2)

    return out_t[:, :N].T                                   # (N, C)


# ----------------------------------------------------------------------------
# Deterministic stand-in "backbones" (plain-JAX glue, not the hot path).
# They only exist to map the NCHW image x to feature tensors of the shapes the
# real EfficientNet-B0 / ViT would produce.  They emit bf16 so the head's
# dominant operand is already in its streaming dtype (no separate cast pass).
# ----------------------------------------------------------------------------
def standin_efficientnet_features(x, proj, out_dtype=jnp.bfloat16):
    # x: (N, 3, H, W) NCHW -> downsample spatially to 4x4, channels-last, 1x1 proj to 1280.
    N, C, H, W = x.shape
    Hf = Wf = 4
    x = x.reshape(N, C, Hf, H // Hf, Wf, W // Wf).mean(axis=(3, 5))   # (N, 3, 4, 4)
    x = jnp.transpose(x, (0, 2, 3, 1)).reshape(N, Hf * Wf, C)         # (N, 16, 3)
    return (x @ proj).astype(out_dtype)                               # (N, 16, 1280)


def standin_vit_cls(x, proj, out_dtype=jnp.bfloat16):
    # x: (N, 3, H, W) -> flatten -> project to 768 (stand-in for last_hidden_state[:, 0, :]).
    N = x.shape[0]
    return (x.reshape(N, -1) @ proj).astype(out_dtype)                # (N, 768)


class EnsembleModelPallas:
    def __init__(self, num_classes, key):
        k1, k2, k3, k4 = jax.random.split(key, 4)
        in_dim = EFF_C + VIT_C
        bound = 1.0 / jnp.sqrt(in_dim)
        # nn.Linear(1280 + 768, num_classes): weight (C_out, C_in), bias (C_out,)
        fc_w = jax.random.uniform(k1, (num_classes, in_dim), jnp.float32, -bound, bound)
        self.fc_b = jax.random.uniform(k2, (num_classes,), jnp.float32, -bound, bound)
        self.w_eff = fc_w[:, :EFF_C]          # (C, 1280)  PyTorch layout
        self.w_vit = fc_w[:, EFF_C:]          # (C, 768)
        # stand-in backbone projections (deterministic)
        self.eff_proj = jax.random.normal(k3, (3, EFF_C), jnp.float32) * 0.02
        self.vit_proj = jax.random.normal(k4, (3 * 32 * 32, VIT_C), jnp.float32) * 0.02

    def __call__(self, x):
        eff_map = standin_efficientnet_features(x, self.eff_proj)     # (N, 16, 1280) bf16
        vit_cls = standin_vit_cls(x, self.vit_proj)                   # (N, 768) bf16
        return ensemble_head(eff_map, vit_cls, self.w_eff, self.w_vit, self.fc_b)

    def reference(self, x):
        # f32 reference mirroring the PyTorch module: pool-mean, concat, fc.
        eff_map = standin_efficientnet_features(x, self.eff_proj, out_dtype=jnp.float32)
        pooled = eff_map.mean(axis=1)                                  # (N, 1280)
        vit_cls = standin_vit_cls(x, self.vit_proj, out_dtype=jnp.float32)
        feats = jnp.concatenate([pooled, vit_cls], axis=1)             # (N, 2048)
        w_full = jnp.concatenate([self.w_eff, self.w_vit], axis=1)     # (C, 2048)
        return feats @ w_full.T + self.fc_b


if __name__ == "__main__":
    key = jax.random.PRNGKey(0)
    k_model, k_x = jax.random.split(key)
    model = EnsembleModelPallas(NUM_CLASSES, k_model)

    # small NCHW image batch: batch=2, channels=3, spatial=32
    x = jax.random.normal(k_x, (2, 3, 32, 32), jnp.float32)

    out = model(x)
    out = jax.block_until_ready(out)

    ref = model.reference(x)
    assert out.shape == (2, NUM_CLASSES)
    # Tolerance reflects bf16 feature/weight quantization (f32 accumulation inside).
    assert jnp.allclose(out, ref, atol=2e-2, rtol=2e-2), "mismatch vs reference"
    print("KERNEL_OK")
</pallas_src>

<mosaic_0001>
module attributes {stable_mosaic.version = 11 : i64} {
  func.func @ensemble_head_kernel(%arg0: i32, %arg1: memref<2x20480xbf16, #tpu.memory_space<vmem>>, %arg2: memref<2x768xbf16, #tpu.memory_space<vmem>>, %arg3: memref<4x20480xbf16, #tpu.memory_space<vmem>>, %arg4: memref<4x768xbf16, #tpu.memory_space<vmem>>, %arg5: memref<4x1xf32, #tpu.memory_space<vmem>>, %arg6: memref<4x2xf32, #tpu.memory_space<vmem>>) attributes {dimension_semantics = [#tpu.dimension_semantics<parallel>], iteration_bounds = array<i64: 1>, scalar_prefetch = 0 : i64, scratch_operands = 0 : i64, tpu.core_type = #tpu.core_type<tc>, window_params = [{transform_indices = @transform_0, window_bounds = array<i64: 2, 20480>}, {transform_indices = @transform_1, window_bounds = array<i64: 2, 768>}, {pipeline_mode = #tpu.pipeline_mode<synchronous>, transform_indices = @transform_2, window_bounds = array<i64: 4, 20480>}, {pipeline_mode = #tpu.pipeline_mode<synchronous>, transform_indices = @transform_3, window_bounds = array<i64: 4, 768>}, {pipeline_mode = #tpu.pipeline_mode<synchronous>, transform_indices = @transform_4, window_bounds = array<i64: 4, 1>}, {transform_indices = @transform_5, window_bounds = array<i64: 4, 2>}]} {
    %c0 = arith.constant 0 : index
    %c0_0 = arith.constant 0 : index
    %0 = vector.load %arg3[%c0, %c0_0] : memref<4x20480xbf16, #tpu.memory_space<vmem>>, vector<4x20480xbf16>
    %c0_1 = arith.constant 0 : index
    %c0_2 = arith.constant 0 : index
    %1 = vector.load %arg1[%c0_1, %c0_2] : memref<2x20480xbf16, #tpu.memory_space<vmem>>, vector<2x20480xbf16>
    %cst = arith.constant dense<0.000000e+00> : vector<4x2xf32>
    %2 = tpu.matmul %0, %1, %cst {dimension_numbers = #tpu.dot_dimension_numbers<[1], [1], [0], [0], [0, 0, 1, 0], [], []>} : vector<4x20480xbf16>, vector<2x20480xbf16>, vector<4x2xf32> -> vector<4x2xf32>
    %c0_3 = arith.constant 0 : index
    %c0_4 = arith.constant 0 : index
    %3 = vector.load %arg4[%c0_3, %c0_4] : memref<4x768xbf16, #tpu.memory_space<vmem>>, vector<4x768xbf16>
    %c0_5 = arith.constant 0 : index
    %c0_6 = arith.constant 0 : index
    %4 = vector.load %arg2[%c0_5, %c0_6] : memref<2x768xbf16, #tpu.memory_space<vmem>>, vector<2x768xbf16>
    %cst_7 = arith.constant dense<0.000000e+00> : vector<4x2xf32>
    %5 = tpu.matmul %3, %4, %cst_7 {dimension_numbers = #tpu.dot_dimension_numbers<[1], [1], [0], [0], [0, 0, 1, 0], [], []>} : vector<4x768xbf16>, vector<2x768xbf16>, vector<4x2xf32> -> vector<4x2xf32>
    %6 = arith.addf %2, %5 : vector<4x2xf32>
    %c0_8 = arith.constant 0 : index
    %c0_9 = arith.constant 0 : index
    %7 = vector.load %arg5[%c0_8, %c0_9] : memref<4x1xf32, #tpu.memory_space<vmem>>, vector<4x1xf32>
    %8 = vector.broadcast %7 : vector<4x1xf32> to vector<4x2xf32>
    %9 = arith.addf %6, %8 : vector<4x2xf32>
    %c0_10 = arith.constant 0 : index
    %c0_11 = arith.constant 0 : index
    %10 = vector.load %arg6[%c0_10, %c0_11] : memref<4x2xf32, #tpu.memory_space<vmem>>, vector<4x2xf32>
    tpu.vector_store %arg6[%c0_10, %c0_11], %9 {strides = array<i32>} : memref<4x2xf32, #tpu.memory_space<vmem>>, vector<4x2xf32>,
    return
  }
  func.func @transform_0(%arg0: i32) -> (i32, i32) {
    %c0_i32 = arith.constant 0 : i32
    %c0_i32_0 = arith.constant 0 : i32
    return %arg0, %c0_i32 : i32, i32
  }
  func.func @transform_1(%arg0: i32) -> (i32, i32) {
    %c0_i32 = arith.constant 0 : i32
    %c0_i32_0 = arith.constant 0 : i32
    return %arg0, %c0_i32 : i32, i32
  }
  func.func @transform_2(%arg0: i32) -> (i32, i32) {
    %c0_i32 = arith.constant 0 : i32
    %c0_i32_0 = arith.constant 0 : i32
    %c0_i32_1 = arith.constant 0 : i32
    return %c0_i32, %c0_i32_0 : i32, i32
  }
  func.func @transform_3(%arg0: i32) -> (i32, i32) {
    %c0_i32 = arith.constant 0 : i32
    %c0_i32_0 = arith.constant 0 : i32
    %c0_i32_1 = arith.constant 0 : i32
    return %c0_i32, %c0_i32_0 : i32, i32
  }
  func.func @transform_4(%arg0: i32) -> (i32, i32) {
    %c0_i32 = arith.constant 0 : i32
    %c0_i32_0 = arith.constant 0 : i32
    %c0_i32_1 = arith.constant 0 : i32
    return %c0_i32, %c0_i32_0 : i32, i32
  }
  func.func @transform_5(%arg0: i32) -> (i32, i32) {
    %c0_i32 = arith.constant 0 : i32
    %c0_i32_0 = arith.constant 0 : i32
    return %c0_i32, %arg0 : i32, i32
  }
}

</mosaic_0001>

<bundles_post_ra>
// kernel: tpu_custom_call.1
= control target key start
LH: loop header
LB: loop body
LE: loop exit
PB: predicated region body
PF: predicated region fallthrough
CT: control target
= control target key end

     0   :  { %10 = vsyncpa [#allocation3], 0  ;;  %s6017_s0 = inlined_call_operand.hbm [shape: bf16[2,20480], index: 0, kind: input, shape index: {}]   ;;  %s6018_s1 = inlined_call_operand.hbm [shape: bf16[2,768], index: 1, kind: input, shape index: {}]   ;;  %s6019_s2 = inlined_call_operand.hbm [shape: bf16[4,20480], index: 2, kind: input, shape index: {}]   ;;  %s6020_s3 = inlined_call_operand.vmem [shape: bf16[4,768], index: 3, kind: input, shape index: {}]   ;;  %s6021_s4 = inlined_call_operand.vmem [shape: f32[4,1], index: 4, kind: input, shape index: {}]   ;;  %s6022_s5 = inlined_call_operand.vmem [shape: f32[4,2], index: 5, kind: output, shape index: {}]  }
   0x1   :  { %11 = vsyncpa [#allocation5], 0  ;;  %s5721_s18 = smov [#allocation4]   ;;  %s5722_s20 = smov [#allocation2]  }
   0x2   :  { %s28_s19 = sshll.u32 %s5721_s18, 4  ;;  %s18_s21 = sshll.u32 %s5722_s20, 4  ;;  %s29_s19 = int_to_ptr.vmem [resolvable:$true] %s28_s19  ;;  %s19_s21 = int_to_ptr.vmem [resolvable:$true] %s18_s21 }
   0x3   :  { %s5651_s24 = scalar_lea.hbm %s6018_s1, 96 }
   0x4   :  { %p5652_p0 = scmp.ne.s32.totalorder %s6018_s1, %s5651_s24  ;;  %p5655_p1 = scmp.lt.u32.totalorder %s5651_s24, %s6018_s1 }
   0x6   :  { %p5657_p2 = pnand %p5655_p1, %p5652_p0 }
   0x8   :  { %5660 = shalt.err (!%p5657_p2)
}
   0x9   :  { %s5661_s29 = scalar_lea.vmem %s29_s19, 96  ;;  %p5666_p4 = scmp.lt.s32.totalorder %s29_s19, %s29_s19 }
   0xa   :  { %p5662_p3 = scmp.ne.s32.totalorder %s29_s19, %s5661_s29  ;;  %p5667_p5 = scmp.lt.s32.totalorder %s5661_s29, %s5661_s29 }
   0xc   :  { %p5668_p6 = por %p5667_p5, %p5666_p4 }
   0xe   :  { %p5669_p7 = pnand %p5668_p6, %p5662_p3 }
  0x10   :  { %5672 = shalt.err (!%p5669_p7)
}
  0x11   :  { %31 = dma.hbm_to_vmem [thread:$0]  %s6018_s1, 96, %s29_s19, [#allocation5]  }
  0x12   :  { %s5673_s9 = scalar_lea.hbm %s6017_s0, 2560 }
  0x13   :  { %p5674_p8 = scmp.ne.s32.totalorder %s6017_s0, %s5673_s9  ;;  %p5677_p9 = scmp.lt.u32.totalorder %s5673_s9, %s6017_s0 }
  0x15   :  { %p5679_p10 = pnand %p5677_p9, %p5674_p8 }
  0x17   :  { %5682 = shalt.err (!%p5679_p10)
}
  0x18   :  { %s5683_s14 = scalar_lea.vmem %s19_s21, 2560  ;;  %p5688_p12 = scmp.lt.s32.totalorder %s19_s21, %s19_s21 }
  0x19   :  { %p5684_p11 = scmp.ne.s32.totalorder %s19_s21, %s5683_s14  ;;  %p5689_p13 = scmp.lt.s32.totalorder %s5683_s14, %s5683_s14 }
  0x1b   :  { %p5690_p0 = por %p5689_p13, %p5688_p12 }
  0x1d   :  { %p5691_p1 = pnand %p5690_p0, %p5684_p11 }
  0x1f   :  { %5694 = shalt.err (!%p5691_p1)
}
  0x20   :  { %21 = dma.hbm_to_vmem [thread:$0]  %s6017_s0, 2560, %s19_s21, [#allocation3]  }
  0x21   :  { %s5723_s16 = smov [#allocation6]   ;;  %s5695_s20 = scalar_lea.hbm %s6019_s2, 5120 }
  0x22   :  { %s38_s17 = sshll.u32 %s5723_s16, 4  ;;  %p5696_p2 = scmp.ne.s32.totalorder %s6019_s2, %s5695_s20  ;;  %s39_s17 = int_to_ptr.vmem [resolvable:$true] %s38_s17 }
  0x23   :  { %p5699_p3 = scmp.lt.u32.totalorder %s5695_s20, %s6019_s2 }
  0x25   :  { %p5701_p4 = pnand %p5699_p3, %p5696_p2 }
  0x27   :  { %5704 = shalt.err (!%p5701_p4)
}
  0x28   :  { %s5705_s26 = scalar_lea.vmem %s39_s17, 5120  ;;  %p5710_p6 = scmp.lt.s32.totalorder %s39_s17, %s39_s17 }
  0x29   :  { %p5706_p5 = scmp.ne.s32.totalorder %s39_s17, %s5705_s26  ;;  %p5711_p7 = scmp.lt.s32.totalorder %s5705_s26, %s5705_s26 }
  0x2b   :  { %p5712_p8 = por %p5711_p7, %p5710_p6 }
  0x2d   :  { %p5713_p9 = pnand %p5712_p8, %p5706_p5 }
  0x2f   :  { %5716 = shalt.err (!%p5713_p9)
}
  0x30   :  { %41 = dma.hbm_to_vmem [thread:$0]  %s6019_s2, 5120, %s39_s17, [#allocation5]  }
  0x31   :  { %5717 = dma.done.wait [#allocation3], 2560  }
  0x32   :  { %5718 = vsyncadd [#allocation3], 4294964736 }
  0x33   :  { %5719 = dma.done.wait [#allocation5], 5216  }
  0x34   :  { %5720 = vsyncadd [#allocation5], 4294962080  ;;  %v125_v0 = vlaneseq  ;;  %v5724_v1 = vmov 1966171168   ;;  %v5725_v3 = vmov 1983009808  }
  0x35   :  { %v155_v2 = vunpack.c.l.s4 %v5724_v1  ;;  %v123_v4 = vunpack.c.l.s4 %v5725_v3  ;;  %v118_v10 = vld [vmem:[#allocation4] sm:$0x3f]  ;;  %v56_v32 = vld [vmem:[#allocation6] sm:$0xff]  ;;  %v57_v45 = vld [vmem:[#allocation6 + $0x8] sm:$0xff]  ;;  %vm5573_vm0 = vcmask 11264  }
  0x36   :  { %v126_v5 = vshrl.u32 %v125_v0, 7  ;;  %v116_v11 = vld [vmem:[%s6020_s3] sm:$0xff]  ;;  %v153_v13 = vcombine.high %v118_v10, %v118_v10  ;;  %v5581_v34 = vld.sshfl [vmem:[%s6020_s3 + $0x8] sm:$0x33 pattern:$0x76325410]  ;;  %v366_v39 = vcombine.high %v56_v32, %v56_v32  ;;  %v383_v53 = vcombine.high %v57_v45, %v57_v45 }
  0x37   :  { %v156_v6 = vunpack.c.0.s8 %v155_v2  ;;  %v124_v7 = vunpack.c.0.s8 %v123_v4  ;;  %v96_v12 = vld [vmem:[#allocation2] sm:$0xff]  ;;  %v121_v16 = vcombine.high %v116_v11, %v116_v11  ;;  %v145_v38 = vcombine.high %v5581_v34, %v5581_v34  ;;  %v97_v40 = vld [vmem:[#allocation2 + $0x8] sm:$0xff]  ;;  %v58_v58 = vld [vmem:[#allocation6 + $0x10] sm:$0xff] }
  0x38   :  { %v1226_v18 = vcombine.high %v96_v12, %v96_v12  ;;  %v1275_v50 = vcombine.high %v97_v40, %v97_v40  ;;  %v400_v1 = vcombine.high %v58_v58, %v58_v58  ;;  %v98_v2 = vld [vmem:[#allocation2 + $0x10] sm:$0xff] }
  0x39   :  { %v5793_v8 = vsub.s32 %v156_v6, %v126_v5  ;;  %v5795_v9 = vsub.s32 %v124_v7, %v126_v5  ;;  %v59_v7 = vld [vmem:[#allocation6 + $0x18] sm:$0xff] }
  0x3b   :  { %v160_v14 = vrot.slane %v118_v10, %v5793_v8  ;;  %v128_v15 = vrot.slane %v116_v11, %v5795_v9  ;;  %v1233_v17 = vrot.slane %v96_v12, %v5793_v8  ;;  %v167_v22 = vrot.slane %v153_v13, %v5793_v8 }
  0x3c   :  { %v135_v23 = vrot.slane %v121_v16, %v5795_v9  ;;  %v1240_v33 = vrot.slane %v1226_v18, %v5793_v8  ;;  %v373_v35 = vrot.slane %v56_v32, %v5795_v9  ;;  %v1282_v46 = vrot.slane %v97_v40, %v5793_v8 }
  0x3d   :  { %v168_v19 = vcombine.high %v160_v14, %v160_v14  ;;  %v176_v20 = vrot.slane %v160_v14, %v5793_v8  ;;  %v136_v21 = vcombine.high %v128_v15, %v128_v15  ;;  %v1241_v24 = vcombine.high %v1233_v17, %v1233_v17 }
  0x3e   :  { %v169_v26 = vcombine.high %v167_v22, %v167_v22  ;;  %v137_v28 = vcombine.high %v135_v23, %v135_v23  ;;  %v1242_v36 = vcombine.high %v1240_v33, %v1240_v33  ;;  %v183_v37 = vrot.slane %v167_v22, %v5793_v8  ;;  %v60_v22 = vld [vmem:[#allocation6 + $0x20] sm:$0xff] }
  0x3f   :  { %v190_v25 = vrot.slane %v168_v19, %v5793_v8  ;;  %238 = vmatprep.mubr.bf16.mxu0 %v136_v21  ;;  %v198_v27 = vcombine.high %v176_v20, %v176_v20  ;;  %v1263_v31 = vrot.slane %v1241_v24, %v5793_v8  ;;  %v1249_v42 = vrot.slane %v1233_v17, %v5793_v8 }
  0x40   :  { %v197_v30 = vrot.slane %v169_v26, %v5793_v8  ;;  %278 = vmatprep.mubr.bf16.mxu1 %v137_v28  ;;  %v381_v43 = vcombine.high %v373_v35, %v373_v35  ;;  %v1270_v44 = vrot.slane %v1242_v36, %v5793_v8  ;;  %v380_v47 = vrot.slane %v366_v39, %v5795_v9 }
  0x41   :  { %206 = vmatprep.subr.bf16.mxu0 %v190_v25  ;;  %v199_v29 = vcombine.high %v190_v25, %v190_v25  ;;  %v1273_v41 = vcombine.high %v1263_v31, %v1263_v31  ;;  %v390_v48 = vrot.slane %v57_v45, %v5795_v9  ;;  %v1290_v49 = vcombine.high %v1282_v46, %v1282_v46 }
  0x42   :  { %207 = vmatpush1.bf16.xpose.msra.mxu0 %v176_v20  ;;  %v1271_v51 = vcombine.high %v1249_v42, %v1249_v42  ;;  %v382_v52 = vcombine.high %v380_v47, %v380_v47  ;;  %v1274_v54 = vcombine.high %v1270_v44, %v1270_v44  ;;  %v1256_v55 = vrot.slane %v1240_v33, %v5793_v8 }
  0x43   :  { %246 = vmatprep.subr.bf16.mxu1 %v199_v29  ;;  %286 = vmatprep.subr.bf16.mxu0 %v197_v30  ;;  %v398_v56 = vcombine.high %v390_v48, %v390_v48  ;;  %v1312_v57 = vrot.slane %v1290_v49, %v5793_v8  ;;  %v1289_v59 = vrot.slane %v1275_v50, %v5793_v8  ;;  %v99_v30 = vld [vmem:[#allocation2 + $0x18] sm:$0xff] }
  0x44   :  { %247 = vmatpush1.bf16.xpose.msra.mxu1 %v198_v27  ;;  %v397_v60 = vrot.slane %v383_v53, %v5795_v9  ;;  %v407_v61 = vrot.slane %v58_v58, %v5795_v9  ;;  %v1272_v63 = vcombine.high %v1256_v55, %v1256_v55  ;;  %v1298_v4 = vrot.slane %v1282_v46, %v5793_v8 }
  0x45   :  { %2366 = vmatprep.subr.bf16.mxu1 %v1263_v31  ;;  %v1291_v62 = vcombine.high %v1289_v59, %v1289_v59  ;;  %v1322_v3 = vcombine.high %v1312_v57, %v1312_v57  ;;  %v1331_v10 = vrot.slane %v98_v2, %v5793_v8  ;;  %v414_v11 = vrot.slane %v400_v1, %v5795_v9 }
  0x46   :  { %v399_v0 = vcombine.high %v397_v60, %v397_v60  ;;  %v415_v5 = vcombine.high %v407_v61, %v407_v61  ;;  %v424_v12 = vrot.slane %v59_v7, %v5795_v9  ;;  %v1324_v14 = vcombine.high %v98_v2, %v98_v2 }
  0x47   :  { %v1319_v6 = vrot.slane %v1291_v62, %v5793_v8  ;;  %v1339_v13 = vcombine.high %v1331_v10, %v1331_v10  ;;  %v416_v16 = vcombine.high %v414_v11, %v414_v11  ;;  %v417_v17 = vcombine.high %v59_v7, %v59_v7 }
  0x48   :  { %v1305_v19 = vrot.slane %v1289_v59, %v5793_v8  ;;  %v432_v20 = vcombine.high %v424_v12, %v424_v12  ;;  %v441_v25 = vrot.slane %v60_v22, %v5795_v9  ;;  %v434_v29 = vcombine.high %v60_v22, %v60_v22 }
  0x49   :  { %239 = vmatmul.mubr.bf16.vlgmr.msra.gmra.mrb[0].mxu0 %v128_v15  ;;  %v1320_v15 = vcombine.high %v1298_v4, %v1298_v4  ;;  %v1323_v18 = vcombine.high %v1319_v6, %v1319_v6  ;;  %v1361_v21 = vrot.slane %v1339_v13, %v5793_v8  ;;  %v431_v24 = vrot.slane %v417_v17, %v5795_v9 }
  0x4a   :  { %287 = vmatpush1.bf16.xpose.msra.mxu0 %v183_v37  ;;  %318 = vmatprep.mubr.bf16.mxu0 %v145_v38  ;;  %v1321_v27 = vcombine.high %v1305_v19, %v1305_v19  ;;  %v1347_v32 = vrot.slane %v1331_v10, %v5793_v8  ;;  %v449_v33 = vcombine.high %v441_v25, %v441_v25 }
  0x4b   :  { %279 = vmatmul.mubr.bf16.vlgmr.msra.gmra.mrb[0].mxu1 %v135_v23  ;;  %2406 = vmatprep.subr.bf16.mxu0 %v1273_v41  ;;  %v1338_v23 = vrot.slane %v1324_v14, %v5793_v8  ;;  %v433_v28 = vcombine.high %v431_v24, %v431_v24  ;;  %v1371_v31 = vcombine.high %v1361_v21, %v1361_v21 }
  0x4c   :  { %2367 = vmatpush1.bf16.xpose.msra.mxu1 %v1249_v42  ;;  %2398 = vmatprep.mubr.bf16.mxu1 %v381_v43  ;;  %v1380_v36 = vrot.slane %v99_v30, %v5793_v8  ;;  %v448_v37 = vrot.slane %v434_v29, %v5795_v9  ;;  %v1373_v40 = vcombine.high %v99_v30, %v99_v30 }
  0x4d   :  { %2446 = vmatprep.subr.bf16.mxu1 %v1270_v44  ;;  %v1340_v26 = vcombine.high %v1338_v23, %v1338_v23  ;;  %v1369_v41 = vcombine.high %v1347_v32, %v1347_v32  ;;  %v1354_v45 = vrot.slane %v1338_v23, %v5793_v8 }
  0x4e   :  { %v1388_v39 = vcombine.high %v1380_v36, %v1380_v36  ;;  %v450_v42 = vcombine.high %v448_v37, %v448_v37  ;;  %v1387_v49 = vrot.slane %v1373_v40, %v5793_v8  ;;  %v1396_v58 = vrot.slane %v1380_v36, %v5793_v8 }
  0x4f   :  { %v1370_v53 = vcombine.high %v1354_v45, %v1354_v45 }
  0x50   :  { %v1403_v7 = vrot.slane %v1387_v49, %v5793_v8 }
  0x51   :  { %319 = vmatmul.mubr.bf16.vlgmr.msra.gmra.mrb[4].mxu0 %v5581_v34  ;;  %v1368_v34 = vrot.slane %v1340_v26, %v5793_v8 }
  0x52   :  { %2407 = vmatpush1.bf16.xpose.msra.mxu0 %v1271_v51  ;;  %2438 = vmatprep.mubr.bf16.mxu0 %v382_v52  ;;  %v1389_v52 = vcombine.high %v1387_v49, %v1387_v49  ;;  %v1419_v17 = vcombine.high %v1403_v7, %v1403_v7 }
  0x53   :  { %2399 = vmatmul.mubr.bf16.vlgmr.msra.gmra.mrb[4].mxu1 %v373_v35  ;;  %2486 = vmatprep.subr.bf16.mxu0 %v1274_v54  ;;  %v61_v35 = vld [vmem:[#allocation6 + $0x28] sm:$0xff]  ;;  %v1372_v44 = vcombine.high %v1368_v34, %v1368_v34 }
  0x54   :  { %2447 = vmatpush1.bf16.xpose.msra.mxu1 %v1256_v55  ;;  %2478 = vmatprep.mubr.bf16.mxu1 %v398_v56  ;;  %v458_v38 = vrot.slane %v61_v35, %v5795_v9  ;;  %v451_v43 = vcombine.high %v61_v35, %v61_v35  ;;  %v100_v56 = vld [vmem:[#allocation2 + $0x20] sm:$0xff] }
  0x55   :  { %2526 = vmatprep.subr.bf16.mxu1 %v1312_v57  ;;  %v1429_v62 = vrot.slane %v100_v56, %v5793_v8  ;;  %v1422_v2 = vcombine.high %v100_v56, %v100_v56 }
  0x56   :  { %v466_v46 = vcombine.high %v458_v38, %v458_v38  ;;  %v465_v50 = vrot.slane %v451_v43, %v5795_v9 }
  0x57   :  { %v1437_v1 = vcombine.high %v1429_v62, %v1429_v62  ;;  %v1436_v13 = vrot.slane %v1422_v2, %v5793_v8  ;;  %v1445_v22 = vrot.slane %v1429_v62, %v5793_v8 }
  0x58   :  { %v467_v54 = vcombine.high %v465_v50, %v465_v50 }
  0x59   :  { %2439 = vmatmul.mubr.bf16.vlgmr.msra.gmra.mrb[8].mxu0 %v380_v47  ;;  %v1410_v47 = vrot.slane %v1388_v39, %v5793_v8  ;;  %v1452_v35 = vrot.slane %v1436_v13, %v5793_v8 }
  0x5a   :  { %2487 = vmatpush1.bf16.xpose.msra.mxu0 %v1272_v63  ;;  %2518 = vmatprep.mubr.bf16.mxu0 %v399_v0 }
  0x5b   :  { %2479 = vmatmul.mubr.bf16.vlgmr.msra.gmra.mrb[8].mxu1 %v390_v48  ;;  %2566 = vmatprep.subr.bf16.mxu0 %v1322_v3  ;;  %v62_v48 = vld [vmem:[#allocation6 + $0x30] sm:$0xff]  ;;  %v1420_v57 = vcombine.high %v1410_v47, %v1410_v47  ;;  %v1418_v3 = vcombine.high %v1396_v58, %v1396_v58  ;;  %v1468_v43 = vcombine.high %v1452_v35, %v1452_v35 }
  0x5c   :  { %2527 = vmatpush1.bf16.xpose.msra.mxu1 %v1298_v4  ;;  %2558 = vmatprep.mubr.bf16.mxu1 %v415_v5  ;;  %v475_v51 = vrot.slane %v62_v48, %v5795_v9  ;;  %v468_v55 = vcombine.high %v62_v48, %v62_v48 }
  0x5d   :  { %2606 = vmatprep.subr.bf16.mxu1 %v1319_v6 }
  0x5e   :  { %v483_v59 = vcombine.high %v475_v51, %v475_v51  ;;  %v482_v63 = vrot.slane %v468_v55, %v5795_v9 }
  0x60   :  { %v484_v4 = vcombine.high %v482_v63, %v482_v63 }
  0x61   :  { %2519 = vmatmul.mubr.bf16.vlgmr.msra.gmra.mrb[12].mxu0 %v397_v60  ;;  %v1417_v60 = vrot.slane %v1389_v52, %v5793_v8 }
  0x62   :  { %2567 = vmatpush1.bf16.xpose.msra.mxu0 %v1320_v15  ;;  %2598 = vmatprep.mubr.bf16.mxu0 %v416_v16  ;;  %v1438_v16 = vcombine.high %v1436_v13, %v1436_v13 }
  0x63   :  { %2559 = vmatmul.mubr.bf16.vlgmr.msra.gmra.mrb[12].mxu1 %v407_v61  ;;  %2646 = vmatprep.subr.bf16.mxu0 %v1323_v18  ;;  %v63_v61 = vld [vmem:[#allocation6 + $0x38] sm:$0xff]  ;;  %v1421_v6 = vcombine.high %v1417_v60, %v1417_v60 }
  0x64   :  { %2607 = vmatpush1.bf16.xpose.msra.mxu1 %v1305_v19  ;;  %2638 = vmatprep.mubr.bf16.mxu1 %v432_v20  ;;  %v492_v0 = vrot.slane %v63_v61, %v5795_v9  ;;  %v485_v5 = vcombine.high %v63_v61, %v63_v61  ;;  %v101_v20 = vld [vmem:[#allocation2 + $0x28] sm:$0xff] }
  0x65   :  { %2686 = vmatprep.subr.bf16.mxu1 %v1361_v21  ;;  %v1478_v26 = vrot.slane %v101_v20, %v5793_v8  ;;  %v1471_v30 = vcombine.high %v101_v20, %v101_v20 }
  0x66   :  { %v500_v10 = vcombine.high %v492_v0, %v492_v0  ;;  %v499_v14 = vrot.slane %v485_v5, %v5795_v9 }
  0x67   :  { %v1486_v29 = vcombine.high %v1478_v26, %v1478_v26  ;;  %v1485_v39 = vrot.slane %v1471_v30, %v5793_v8  ;;  %v1494_v48 = vrot.slane %v1478_v26, %v5793_v8 }
  0x68   :  { %v501_v18 = vcombine.high %v499_v14, %v499_v14 }
  0x69   :  { %2599 = vmatmul.mubr.bf16.vlgmr.msra.gmra.mrb[16].mxu0 %v414_v11  ;;  %v1459_v11 = vrot.slane %v1437_v1, %v5793_v8  ;;  %v1501_v61 = vrot.slane %v1485_v39, %v5793_v8 }
  0x6a   :  { %2647 = vmatpush1.bf16.xpose.msra.mxu0 %v1321_v27  ;;  %2678 = vmatprep.mubr.bf16.mxu0 %v433_v28 }
  0x6b   :  { %2639 = vmatmul.mubr.bf16.vlgmr.msra.gmra.mrb[16].mxu1 %v424_v12  ;;  %2726 = vmatprep.subr.bf16.mxu0 %v1371_v31  ;;  %v64_v12 = vld [vmem:[#allocation6 + $0x40] sm:$0xff]  ;;  %v1469_v21 = vcombine.high %v1459_v11, %v1459_v11  ;;  %v1467_v31 = vcombine.high %v1445_v22, %v1445_v22  ;;  %v1517_v5 = vcombine.high %v1501_v61, %v1501_v61 }
  0x6c   :  { %2687 = vmatpush1.bf16.xpose.msra.mxu1 %v1347_v32  ;;  %2718 = vmatprep.mubr.bf16.mxu1 %v449_v33  ;;  %v509_v15 = vrot.slane %v64_v12, %v5795_v9  ;;  %v502_v19 = vcombine.high %v64_v12, %v64_v12 }
  0x6d   :  { %2766 = vmatprep.subr.bf16.mxu1 %v1368_v34 }
  0x6e   :  { %v517_v23 = vcombine.high %v509_v15, %v509_v15  ;;  %v516_v27 = vrot.slane %v502_v19, %v5795_v9 }
  0x70   :  { %v518_v32 = vcombine.high %v516_v27, %v516_v27 }
  0x71   :  { %2679 = vmatmul.mubr.bf16.vlgmr.msra.gmra.mrb[20].mxu0 %v431_v24  ;;  %v1466_v24 = vrot.slane %v1438_v16, %v5793_v8 }
  0x72   :  { %2727 = vmatpush1.bf16.xpose.msra.mxu0 %v1369_v41  ;;  %2758 = vmatprep.mubr.bf16.mxu0 %v450_v42  ;;  %v1487_v42 = vcombine.high %v1485_v39, %v1485_v39 }
  0x73   :  { %2719 = vmatmul.mubr.bf16.vlgmr.msra.gmra.mrb[20].mxu1 %v441_v25  ;;  %2806 = vmatprep.subr.bf16.mxu0 %v1372_v44  ;;  %v65_v25 = vld [vmem:[#allocation6 + $0x48] sm:$0xff]  ;;  %v1470_v34 = vcombine.high %v1466_v24, %v1466_v24 }
  0x74   :  { %2767 = vmatpush1.bf16.xpose.msra.mxu1 %v1354_v45  ;;  %2798 = vmatprep.mubr.bf16.mxu1 %v466_v46  ;;  %v526_v28 = vrot.slane %v65_v25, %v5795_v9  ;;  %v519_v33 = vcombine.high %v65_v25, %v65_v25  ;;  %v102_v46 = vld [vmem:[#allocation2 + $0x30] sm:$0xff] }
  0x75   :  { %2846 = vmatprep.subr.bf16.mxu1 %v1410_v47  ;;  %v1527_v52 = vrot.slane %v102_v46, %v5793_v8  ;;  %v1520_v56 = vcombine.high %v102_v46, %v102_v46 }
  0x76   :  { %v534_v36 = vcombine.high %v526_v28, %v526_v28  ;;  %v533_v40 = vrot.slane %v519_v33, %v5795_v9 }
  0x77   :  { %v1535_v55 = vcombine.high %v1527_v52, %v1527_v52  ;;  %v1534_v1 = vrot.slane %v1520_v56, %v5793_v8  ;;  %v1543_v12 = vrot.slane %v1527_v52, %v5793_v8 }
  0x78   :  { %v535_v44 = vcombine.high %v533_v40, %v533_v40 }
  0x79   :  { %2759 = vmatmul.mubr.bf16.vlgmr.msra.gmra.mrb[24].mxu0 %v448_v37  ;;  %v1508_v37 = vrot.slane %v1486_v29, %v5793_v8  ;;  %v1550_v25 = vrot.slane %v1534_v1, %v5793_v8 }
  0x7a   :  { %2807 = vmatpush1.bf16.xpose.msra.mxu0 %v1370_v53  ;;  %2838 = vmatprep.mubr.bf16.mxu0 %v467_v54 }
  0x7b   :  { %2799 = vmatmul.mubr.bf16.vlgmr.msra.gmra.mrb[24].mxu1 %v458_v38  ;;  %2886 = vmatprep.subr.bf16.mxu0 %v1420_v57  ;;  %v66_v38 = vld [vmem:[#allocation6 + $0x50] sm:$0xff]  ;;  %v1518_v47 = vcombine.high %v1508_v37, %v1508_v37  ;;  %v1516_v57 = vcombine.high %v1494_v48, %v1494_v48  ;;  %v1566_v33 = vcombine.high %v1550_v25, %v1550_v25 }
  0x7c   :  { %2847 = vmatpush1.bf16.xpose.msra.mxu1 %v1396_v58  ;;  %2878 = vmatprep.mubr.bf16.mxu1 %v483_v59  ;;  %v543_v41 = vrot.slane %v66_v38, %v5795_v9  ;;  %v536_v45 = vcombine.high %v66_v38, %v66_v38 }
  0x7d   :  { %2926 = vmatprep.subr.bf16.mxu1 %v1417_v60 }
  0x7e   :  { %v551_v49 = vcombine.high %v543_v41, %v543_v41  ;;  %v550_v53 = vrot.slane %v536_v45, %v5795_v9 }
  0x80   :  { %v552_v58 = vcombine.high %v550_v53, %v550_v53 }
  0x81   :  { %2839 = vmatmul.mubr.bf16.vlgmr.msra.gmra.mrb[28].mxu0 %v465_v50  ;;  %v1515_v50 = vrot.slane %v1487_v42, %v5793_v8 }
  0x82   :  { %2887 = vmatpush1.bf16.xpose.msra.mxu0 %v1418_v3  ;;  %2918 = vmatprep.mubr.bf16.mxu0 %v484_v4  ;;  %v1536_v4 = vcombine.high %v1534_v1, %v1534_v1 }
  0x83   :  { %2879 = vmatmul.mubr.bf16.vlgmr.msra.gmra.mrb[28].mxu1 %v475_v51  ;;  %2966 = vmatprep.subr.bf16.mxu0 %v1421_v6  ;;  %v67_v51 = vld [vmem:[#allocation6 + $0x58] sm:$0xff]  ;;  %v1519_v60 = vcombine.high %v1515_v50, %v1515_v50 }
  0x84   :  { %2927 = vmatpush1.bf16.xpose.msra.mxu1 %v1403_v7  ;;  %2958 = vmatprep.mubr.bf16.mxu1 %v500_v10  ;;  %v560_v54 = vrot.slane %v67_v51, %v5795_v9  ;;  %v553_v59 = vcombine.high %v67_v51, %v67_v51  ;;  %v103_v10 = vld [vmem:[#allocation2 + $0x38] sm:$0xff] }
  0x85   :  { %3006 = vmatprep.subr.bf16.mxu1 %v1459_v11  ;;  %v1576_v16 = vrot.slane %v103_v10, %v5793_v8  ;;  %v1569_v20 = vcombine.high %v103_v10, %v103_v10 }
  0x86   :  { %v568_v62 = vcombine.high %v560_v54, %v560_v54  ;;  %v567_v2 = vrot.slane %v553_v59, %v5795_v9 }
  0x87   :  { %v1584_v19 = vcombine.high %v1576_v16, %v1576_v16  ;;  %v1583_v29 = vrot.slane %v1569_v20, %v5793_v8  ;;  %v1592_v38 = vrot.slane %v1576_v16, %v5793_v8 }
  0x88   :  { %v569_v6 = vcombine.high %v567_v2, %v567_v2 }
  0x89   :  { %2919 = vmatmul.mubr.bf16.vlgmr.msra.gmra.mrb[32].mxu0 %v482_v63  ;;  %v1557_v63 = vrot.slane %v1535_v55, %v5793_v8  ;;  %v1599_v51 = vrot.slane %v1583_v29, %v5793_v8 }
  0x8a   :  { %2967 = vmatpush1.bf16.xpose.msra.mxu0 %v1419_v17  ;;  %2998 = vmatprep.mubr.bf16.mxu0 %v501_v18 }
  0x8b   :  { %2959 = vmatmul.mubr.bf16.vlgmr.msra.gmra.mrb[32].mxu1 %v492_v0  ;;  %3046 = vmatprep.subr.bf16.mxu0 %v1469_v21  ;;  %v68_v0 = vld [vmem:[#allocation6 + $0x60] sm:$0xff]  ;;  %v1567_v11 = vcombine.high %v1557_v63, %v1557_v63  ;;  %v1565_v21 = vcombine.high %v1543_v12, %v1543_v12  ;;  %v1615_v59 = vcombine.high %v1599_v51, %v1599_v51 }
  0x8c   :  { %3007 = vmatpush1.bf16.xpose.msra.mxu1 %v1445_v22  ;;  %3038 = vmatprep.mubr.bf16.mxu1 %v517_v23  ;;  %v577_v3 = vrot.slane %v68_v0, %v5795_v9  ;;  %v570_v7 = vcombine.high %v68_v0, %v68_v0 }
  0x8d   :  { %3086 = vmatprep.subr.bf16.mxu1 %v1466_v24 }
  0x8e   :  { %v585_v13 = vcombine.high %v577_v3, %v577_v3  ;;  %v584_v17 = vrot.slane %v570_v7, %v5795_v9 }
  0x90   :  { %v586_v22 = vcombine.high %v584_v17, %v584_v17 }
  0x91   :  { %2999 = vmatmul.mubr.bf16.vlgmr.msra.gmra.mrb[36].mxu0 %v499_v14  ;;  %v1564_v14 = vrot.slane %v1536_v4, %v5793_v8 }
  0x92   :  { %3047 = vmatpush1.bf16.xpose.msra.mxu0 %v1467_v31  ;;  %3078 = vmatprep.mubr.bf16.mxu0 %v518_v32  ;;  %v1585_v32 = vcombine.high %v1583_v29, %v1583_v29 }
  0x93   :  { %3039 = vmatmul.mubr.bf16.vlgmr.msra.gmra.mrb[36].mxu1 %v509_v15  ;;  %3126 = vmatprep.subr.bf16.mxu0 %v1470_v34  ;;  %v69_v15 = vld [vmem:[#allocation6 + $0x68] sm:$0xff]  ;;  %v1568_v24 = vcombine.high %v1564_v14, %v1564_v14 }
  0x94   :  { %3087 = vmatpush1.bf16.xpose.msra.mxu1 %v1452_v35  ;;  %3118 = vmatprep.mubr.bf16.mxu1 %v534_v36  ;;  %v594_v18 = vrot.slane %v69_v15, %v5795_v9  ;;  %v587_v23 = vcombine.high %v69_v15, %v69_v15  ;;  %v104_v36 = vld [vmem:[#allocation2 + $0x40] sm:$0xff] }
  0x95   :  { %3166 = vmatprep.subr.bf16.mxu1 %v1508_v37  ;;  %v1625_v42 = vrot.slane %v104_v36, %v5793_v8  ;;  %v1618_v46 = vcombine.high %v104_v36, %v104_v36 }
  0x96   :  { %v602_v26 = vcombine.high %v594_v18, %v594_v18  ;;  %v601_v30 = vrot.slane %v587_v23, %v5795_v9 }
  0x97   :  { %v1633_v45 = vcombine.high %v1625_v42, %v1625_v42  ;;  %v1632_v55 = vrot.slane %v1618_v46, %v5793_v8  ;;  %v1641_v0 = vrot.slane %v1625_v42, %v5793_v8 }
  0x98   :  { %v603_v34 = vcombine.high %v601_v30, %v601_v30 }
  0x99   :  { %3079 = vmatmul.mubr.bf16.vlgmr.msra.gmra.mrb[40].mxu0 %v516_v27  ;;  %v1606_v27 = vrot.slane %v1584_v19, %v5793_v8  ;;  %v1648_v15 = vrot.slane %v1632_v55, %v5793_v8 }
  0x9a   :  { %3127 = vmatpush1.bf16.xpose.msra.mxu0 %v1468_v43  ;;  %3158 = vmatprep.mubr.bf16.mxu0 %v535_v44 }
  0x9b   :  { %3119 = vmatmul.mubr.bf16.vlgmr.msra.gmra.mrb[40].mxu1 %v526_v28  ;;  %3206 = vmatprep.subr.bf16.mxu0 %v1518_v47  ;;  %v70_v28 = vld [vmem:[#allocation6 + $0x70] sm:$0xff]  ;;  %v1616_v37 = vcombine.high %v1606_v27, %v1606_v27  ;;  %v1614_v47 = vcombine.high %v1592_v38, %v1592_v38  ;;  %v1664_v23 = vcombine.high %v1648_v15, %v1648_v15 }
  0x9c   :  { %3167 = vmatpush1.bf16.xpose.msra.mxu1 %v1494_v48  ;;  %3198 = vmatprep.mubr.bf16.mxu1 %v551_v49  ;;  %v611_v31 = vrot.slane %v70_v28, %v5795_v9  ;;  %v604_v35 = vcombine.high %v70_v28, %v70_v28 }
  0x9d   :  { %3246 = vmatprep.subr.bf16.mxu1 %v1515_v50 }
  0x9e   :  { %v619_v39 = vcombine.high %v611_v31, %v611_v31  ;;  %v618_v43 = vrot.slane %v604_v35, %v5795_v9 }
  0xa0   :  { %v620_v48 = vcombine.high %v618_v43, %v618_v43 }
  0xa1   :  { %3159 = vmatmul.mubr.bf16.vlgmr.msra.gmra.mrb[44].mxu0 %v533_v40  ;;  %v1613_v40 = vrot.slane %v1585_v32, %v5793_v8 }
  0xa2   :  { %3207 = vmatpush1.bf16.xpose.msra.mxu0 %v1516_v57  ;;  %3238 = vmatprep.mubr.bf16.mxu0 %v552_v58  ;;  %v1634_v58 = vcombine.high %v1632_v55, %v1632_v55 }
  0xa3   :  { %3199 = vmatmul.mubr.bf16.vlgmr.msra.gmra.mrb[44].mxu1 %v543_v41  ;;  %3286 = vmatprep.subr.bf16.mxu0 %v1519_v60  ;;  %v71_v41 = vld [vmem:[#allocation6 + $0x78] sm:$0xff]  ;;  %v1617_v50 = vcombine.high %v1613_v40, %v1613_v40 }
  0xa4   :  { %3247 = vmatpush1.bf16.xpose.msra.mxu1 %v1501_v61  ;;  %3278 = vmatprep.mubr.bf16.mxu1 %v568_v62  ;;  %v628_v44 = vrot.slane %v71_v41, %v5795_v9  ;;  %v621_v49 = vcombine.high %v71_v41, %v71_v41  ;;  %v105_v62 = vld [vmem:[#allocation2 + $0x48] sm:$0xff] }
  0xa5   :  { %3326 = vmatprep.subr.bf16.mxu1 %v1557_v63  ;;  %v1674_v4 = vrot.slane %v105_v62, %v5793_v8  ;;  %v1667_v10 = vcombine.high %v105_v62, %v105_v62 }
  0xa6   :  { %v636_v52 = vcombine.high %v628_v44, %v628_v44  ;;  %v635_v56 = vrot.slane %v621_v49, %v5795_v9 }
  0xa7   :  { %v1682_v7 = vcombine.high %v1674_v4, %v1674_v4  ;;  %v1681_v19 = vrot.slane %v1667_v10, %v5793_v8  ;;  %v1690_v28 = vrot.slane %v1674_v4, %v5793_v8 }
  0xa8   :  { %v637_v60 = vcombine.high %v635_v56, %v635_v56 }
  0xa9   :  { %3239 = vmatmul.mubr.bf16.vlgmr.msra.gmra.mrb[48].mxu0 %v550_v53  ;;  %v1655_v53 = vrot.slane %v1633_v45, %v5793_v8  ;;  %v1697_v41 = vrot.slane %v1681_v19, %v5793_v8 }
  0xaa   :  { %3287 = vmatpush1.bf16.xpose.msra.mxu0 %v1517_v5  ;;  %3318 = vmatprep.mubr.bf16.mxu0 %v569_v6 }
  0xab   :  { %3279 = vmatmul.mubr.bf16.vlgmr.msra.gmra.mrb[48].mxu1 %v560_v54  ;;  %3366 = vmatprep.subr.bf16.mxu0 %v1567_v11  ;;  %v72_v54 = vld [vmem:[#allocation6 + $0x80] sm:$0xff]  ;;  %v1665_v63 = vcombine.high %v1655_v53, %v1655_v53  ;;  %v1663_v11 = vcombine.high %v1641_v0, %v1641_v0  ;;  %v1713_v49 = vcombine.high %v1697_v41, %v1697_v41 }
  0xac   :  { %3327 = vmatpush1.bf16.xpose.msra.mxu1 %v1543_v12  ;;  %3358 = vmatprep.mubr.bf16.mxu1 %v585_v13  ;;  %v645_v57 = vrot.slane %v72_v54, %v5795_v9  ;;  %v638_v61 = vcombine.high %v72_v54, %v72_v54 }
  0xad   :  { %3406 = vmatprep.subr.bf16.mxu1 %v1564_v14 }
  0xae   :  { %v653_v1 = vcombine.high %v645_v57, %v645_v57  ;;  %v652_v5 = vrot.slane %v638_v61, %v5795_v9 }
  0xb0   :  { %v654_v12 = vcombine.high %v652_v5, %v652_v5 }
  0xb1   :  { %3319 = vmatmul.mubr.bf16.vlgmr.msra.gmra.mrb[52].mxu0 %v567_v2  ;;  %v1662_v2 = vrot.slane %v1634_v58, %v5793_v8 }
  0xb2   :  { %3367 = vmatpush1.bf16.xpose.msra.mxu0 %v1565_v21  ;;  %3398 = vmatprep.mubr.bf16.mxu0 %v586_v22  ;;  %v1683_v22 = vcombine.high %v1681_v19, %v1681_v19 }
  0xb3   :  { %3359 = vmatmul.mubr.bf16.vlgmr.msra.gmra.mrb[52].mxu1 %v577_v3  ;;  %3446 = vmatprep.subr.bf16.mxu0 %v1568_v24  ;;  %v73_v3 = vld [vmem:[#allocation6 + $0x88] sm:$0xff]  ;;  %v1666_v14 = vcombine.high %v1662_v2, %v1662_v2 }
  0xb4   :  { %3407 = vmatpush1.bf16.xpose.msra.mxu1 %v1550_v25  ;;  %3438 = vmatprep.mubr.bf16.mxu1 %v602_v26  ;;  %v662_v6 = vrot.slane %v73_v3, %v5795_v9  ;;  %v655_v13 = vcombine.high %v73_v3, %v73_v3  ;;  %v106_v26 = vld [vmem:[#allocation2 + $0x50] sm:$0xff] }
  0xb5   :  { %3486 = vmatprep.subr.bf16.mxu1 %v1606_v27  ;;  %v1723_v32 = vrot.slane %v106_v26, %v5793_v8  ;;  %v1716_v36 = vcombine.high %v106_v26, %v106_v26 }
  0xb6   :  { %v670_v16 = vcombine.high %v662_v6, %v662_v6  ;;  %v669_v20 = vrot.slane %v655_v13, %v5795_v9 }
  0xb7   :  { %v1731_v35 = vcombine.high %v1723_v32, %v1723_v32  ;;  %v1730_v45 = vrot.slane %v1716_v36, %v5793_v8  ;;  %v1739_v54 = vrot.slane %v1723_v32, %v5793_v8 }
  0xb8   :  { %v671_v24 = vcombine.high %v669_v20, %v669_v20 }
  0xb9   :  { %3399 = vmatmul.mubr.bf16.vlgmr.msra.gmra.mrb[56].mxu0 %v584_v17  ;;  %v1704_v17 = vrot.slane %v1682_v7, %v5793_v8  ;;  %v1746_v3 = vrot.slane %v1730_v45, %v5793_v8 }
  0xba   :  { %3447 = vmatpush1.bf16.xpose.msra.mxu0 %v1566_v33  ;;  %3478 = vmatprep.mubr.bf16.mxu0 %v603_v34 }
  0xbb   :  { %3439 = vmatmul.mubr.bf16.vlgmr.msra.gmra.mrb[56].mxu1 %v594_v18  ;;  %3526 = vmatprep.subr.bf16.mxu0 %v1616_v37  ;;  %v74_v18 = vld [vmem:[#allocation6 + $0x90] sm:$0xff]  ;;  %v1714_v27 = vcombine.high %v1704_v17, %v1704_v17  ;;  %v1712_v37 = vcombine.high %v1690_v28, %v1690_v28  ;;  %v1762_v13 = vcombine.high %v1746_v3, %v1746_v3 }
  0xbc   :  { %3487 = vmatpush1.bf16.xpose.msra.mxu1 %v1592_v38  ;;  %3518 = vmatprep.mubr.bf16.mxu1 %v619_v39  ;;  %v679_v21 = vrot.slane %v74_v18, %v5795_v9  ;;  %v672_v25 = vcombine.high %v74_v18, %v74_v18 }
  0xbd   :  { %3566 = vmatprep.subr.bf16.mxu1 %v1613_v40 }
  0xbe   :  { %v687_v29 = vcombine.high %v679_v21, %v679_v21  ;;  %v686_v33 = vrot.slane %v672_v25, %v5795_v9 }
  0xc0   :  { %v688_v38 = vcombine.high %v686_v33, %v686_v33 }
  0xc1   :  { %3479 = vmatmul.mubr.bf16.vlgmr.msra.gmra.mrb[60].mxu0 %v601_v30  ;;  %v1711_v30 = vrot.slane %v1683_v22, %v5793_v8 }
  0xc2   :  { %3527 = vmatpush1.bf16.xpose.msra.mxu0 %v1614_v47  ;;  %3558 = vmatprep.mubr.bf16.mxu0 %v620_v48  ;;  %v1732_v48 = vcombine.high %v1730_v45, %v1730_v45 }
  0xc3   :  { %3519 = vmatmul.mubr.bf16.vlgmr.msra.gmra.mrb[60].mxu1 %v611_v31  ;;  %3606 = vmatprep.subr.bf16.mxu0 %v1617_v50  ;;  %v75_v31 = vld [vmem:[#allocation6 + $0x98] sm:$0xff]  ;;  %v1715_v40 = vcombine.high %v1711_v30, %v1711_v30 }
  0xc4   :  { %3567 = vmatpush1.bf16.xpose.msra.mxu1 %v1599_v51  ;;  %3598 = vmatprep.mubr.bf16.mxu1 %v636_v52  ;;  %v696_v34 = vrot.slane %v75_v31, %v5795_v9  ;;  %v689_v39 = vcombine.high %v75_v31, %v75_v31  ;;  %v107_v52 = vld [vmem:[#allocation2 + $0x58] sm:$0xff] }
  0xc5   :  { %3646 = vmatprep.subr.bf16.mxu1 %v1655_v53  ;;  %v1772_v58 = vrot.slane %v107_v52, %v5793_v8  ;;  %v1765_v62 = vcombine.high %v107_v52, %v107_v52 }
  0xc6   :  { %v704_v42 = vcombine.high %v696_v34, %v696_v34  ;;  %v703_v46 = vrot.slane %v689_v39, %v5795_v9 }
  0xc7   :  { %v1780_v61 = vcombine.high %v1772_v58, %v1772_v58  ;;  %v1779_v7 = vrot.slane %v1765_v62, %v5793_v8  ;;  %v1788_v18 = vrot.slane %v1772_v58, %v5793_v8 }
  0xc8   :  { %v705_v50 = vcombine.high %v703_v46, %v703_v46 }
  0xc9   :  { %3559 = vmatmul.mubr.bf16.vlgmr.msra.gmra.mrb[64].mxu0 %v618_v43  ;;  %v1753_v43 = vrot.slane %v1731_v35, %v5793_v8  ;;  %v1795_v31 = vrot.slane %v1779_v7, %v5793_v8 }
  0xca   :  { %3607 = vmatpush1.bf16.xpose.msra.mxu0 %v1615_v59  ;;  %3638 = vmatprep.mubr.bf16.mxu0 %v637_v60 }
  0xcb   :  { %3599 = vmatmul.mubr.bf16.vlgmr.msra.gmra.mrb[64].mxu1 %v628_v44  ;;  %3686 = vmatprep.subr.bf16.mxu0 %v1665_v63  ;;  %v76_v44 = vld [vmem:[#allocation6 + $0xa0] sm:$0xff]  ;;  %v1763_v53 = vcombine.high %v1753_v43, %v1753_v43  ;;  %v1761_v63 = vcombine.high %v1739_v54, %v1739_v54  ;;  %v1811_v39 = vcombine.high %v1795_v31, %v1795_v31 }
  0xcc   :  { %3647 = vmatpush1.bf16.xpose.msra.mxu1 %v1641_v0  ;;  %3678 = vmatprep.mubr.bf16.mxu1 %v653_v1  ;;  %v713_v47 = vrot.slane %v76_v44, %v5795_v9  ;;  %v706_v51 = vcombine.high %v76_v44, %v76_v44 }
  0xcd   :  { %3726 = vmatprep.subr.bf16.mxu1 %v1662_v2 }
  0xce   :  { %v721_v55 = vcombine.high %v713_v47, %v713_v47  ;;  %v720_v59 = vrot.slane %v706_v51, %v5795_v9 }
  0xd0   :  { %v722_v0 = vcombine.high %v720_v59, %v720_v59 }
  0xd1   :  { %3639 = vmatmul.mubr.bf16.vlgmr.msra.gmra.mrb[68].mxu0 %v635_v56  ;;  %v1760_v56 = vrot.slane %v1732_v48, %v5793_v8 }
  0xd2   :  { %3687 = vmatpush1.bf16.xpose.msra.mxu0 %v1663_v11  ;;  %3718 = vmatprep.mubr.bf16.mxu0 %v654_v12  ;;  %v1781_v12 = vcombine.high %v1779_v7, %v1779_v7 }
  0xd3   :  { %3679 = vmatmul.mubr.bf16.vlgmr.msra.gmra.mrb[68].mxu1 %v645_v57  ;;  %3766 = vmatprep.subr.bf16.mxu0 %v1666_v14  ;;  %v77_v57 = vld [vmem:[#allocation6 + $0xa8] sm:$0xff]  ;;  %v1764_v2 = vcombine.high %v1760_v56, %v1760_v56 }
  0xd4   :  { %3727 = vmatpush1.bf16.xpose.msra.mxu1 %v1648_v15  ;;  %3758 = vmatprep.mubr.bf16.mxu1 %v670_v16  ;;  %v730_v60 = vrot.slane %v77_v57, %v5795_v9  ;;  %v723_v1 = vcombine.high %v77_v57, %v77_v57  ;;  %v108_v16 = vld [vmem:[#allocation2 + $0x60] sm:$0xff] }
  0xd5   :  { %3806 = vmatprep.subr.bf16.mxu1 %v1704_v17  ;;  %v1821_v22 = vrot.slane %v108_v16, %v5793_v8  ;;  %v1814_v26 = vcombine.high %v108_v16, %v108_v16 }
  0xd6   :  { %v738_v4 = vcombine.high %v730_v60, %v730_v60  ;;  %v737_v10 = vrot.slane %v723_v1, %v5795_v9 }
  0xd7   :  { %v1829_v25 = vcombine.high %v1821_v22, %v1821_v22  ;;  %v1828_v35 = vrot.slane %v1814_v26, %v5793_v8  ;;  %v1837_v44 = vrot.slane %v1821_v22, %v5793_v8 }
  0xd8   :  { %v739_v14 = vcombine.high %v737_v10, %v737_v10 }
  0xd9   :  { %3719 = vmatmul.mubr.bf16.vlgmr.msra.gmra.mrb[72].mxu0 %v652_v5  ;;  %v1802_v5 = vrot.slane %v1780_v61, %v5793_v8  ;;  %v1844_v57 = vrot.slane %v1828_v35, %v5793_v8 }
  0xda   :  { %3767 = vmatpush1.bf16.xpose.msra.mxu0 %v1664_v23  ;;  %3798 = vmatprep.mubr.bf16.mxu0 %v671_v24 }
  0xdb   :  { %3759 = vmatmul.mubr.bf16.vlgmr.msra.gmra.mrb[72].mxu1 %v662_v6  ;;  %3846 = vmatprep.subr.bf16.mxu0 %v1714_v27  ;;  %v78_v6 = vld [vmem:[#allocation6 + $0xb0] sm:$0xff]  ;;  %v1812_v17 = vcombine.high %v1802_v5, %v1802_v5  ;;  %v1810_v27 = vcombine.high %v1788_v18, %v1788_v18  ;;  %v1860_v1 = vcombine.high %v1844_v57, %v1844_v57 }
  0xdc   :  { %3807 = vmatpush1.bf16.xpose.msra.mxu1 %v1690_v28  ;;  %3838 = vmatprep.mubr.bf16.mxu1 %v687_v29  ;;  %v747_v11 = vrot.slane %v78_v6, %v5795_v9  ;;  %v740_v15 = vcombine.high %v78_v6, %v78_v6 }
  0xdd   :  { %3886 = vmatprep.subr.bf16.mxu1 %v1711_v30 }
  0xde   :  { %v755_v19 = vcombine.high %v747_v11, %v747_v11  ;;  %v754_v23 = vrot.slane %v740_v15, %v5795_v9 }
  0xe0   :  { %v756_v28 = vcombine.high %v754_v23, %v754_v23 }
  0xe1   :  { %3799 = vmatmul.mubr.bf16.vlgmr.msra.gmra.mrb[76].mxu0 %v669_v20  ;;  %v1809_v20 = vrot.slane %v1781_v12, %v5793_v8 }
  0xe2   :  { %3847 = vmatpush1.bf16.xpose.msra.mxu0 %v1712_v37  ;;  %3878 = vmatprep.mubr.bf16.mxu0 %v688_v38  ;;  %v1830_v38 = vcombine.high %v1828_v35, %v1828_v35 }
  0xe3   :  { %3839 = vmatmul.mubr.bf16.vlgmr.msra.gmra.mrb[76].mxu1 %v679_v21  ;;  %3926 = vmatprep.subr.bf16.mxu0 %v1715_v40  ;;  %v79_v21 = vld [vmem:[#allocation6 + $0xb8] sm:$0xff]  ;;  %v1813_v30 = vcombine.high %v1809_v20, %v1809_v20 }
  0xe4   :  { %3887 = vmatpush1.bf16.xpose.msra.mxu1 %v1697_v41  ;;  %3918 = vmatprep.mubr.bf16.mxu1 %v704_v42  ;;  %v764_v24 = vrot.slane %v79_v21, %v5795_v9  ;;  %v757_v29 = vcombine.high %v79_v21, %v79_v21  ;;  %v109_v42 = vld [vmem:[#allocation2 + $0x68] sm:$0xff] }
  0xe5   :  { %3966 = vmatprep.subr.bf16.mxu1 %v1753_v43  ;;  %v1870_v48 = vrot.slane %v109_v42, %v5793_v8  ;;  %v1863_v52 = vcombine.high %v109_v42, %v109_v42 }
  0xe6   :  { %v772_v32 = vcombine.high %v764_v24, %v764_v24  ;;  %v771_v36 = vrot.slane %v757_v29, %v5795_v9 }
  0xe7   :  { %v1878_v51 = vcombine.high %v1870_v48, %v1870_v48  ;;  %v1877_v61 = vrot.slane %v1863_v52, %v5793_v8  ;;  %v1886_v6 = vrot.slane %v1870_v48, %v5793_v8 }
  0xe8   :  { %v773_v40 = vcombine.high %v771_v36, %v771_v36 }
  0xe9   :  { %3879 = vmatmul.mubr.bf16.vlgmr.msra.gmra.mrb[80].mxu0 %v686_v33  ;;  %v1851_v33 = vrot.slane %v1829_v25, %v5793_v8  ;;  %v1908_v21 = vcombine.high %v1886_v6, %v1886_v6  ;;  %v1893_v29 = vrot.slane %v1877_v61, %v5793_v8 }
  0xea   :  { %3927 = vmatpush1.bf16.xpose.msra.mxu0 %v1713_v49  ;;  %3958 = vmatprep.mubr.bf16.mxu0 %v705_v50 }
  0xeb   :  { %3919 = vmatmul.mubr.bf16.vlgmr.msra.gmra.mrb[80].mxu1 %v696_v34  ;;  %4006 = vmatprep.subr.bf16.mxu0 %v1763_v53  ;;  %v80_v34 = vld [vmem:[#allocation6 + $0xc0] sm:$0xff]  ;;  %v1861_v43 = vcombine.high %v1851_v33, %v1851_v33  ;;  %v1859_v53 = vcombine.high %v1837_v44, %v1837_v44 }
  0xec   :  { %3967 = vmatpush1.bf16.xpose.msra.mxu1 %v1739_v54  ;;  %3998 = vmatprep.mubr.bf16.mxu1 %v721_v55  ;;  %v781_v37 = vrot.slane %v80_v34, %v5795_v9  ;;  %v774_v41 = vcombine.high %v80_v34, %v80_v34 }
  0xed   :  { %4046 = vmatprep.subr.bf16.mxu1 %v1760_v56 }
  0xee   :  { %v789_v45 = vcombine.high %v781_v37, %v781_v37  ;;  %v788_v49 = vrot.slane %v774_v41, %v5795_v9 }
  0xf0   :  { %v790_v54 = vcombine.high %v788_v49, %v788_v49 }
  0xf1   :  { %3959 = vmatmul.mubr.bf16.vlgmr.msra.gmra.mrb[84].mxu0 %v703_v46  ;;  %v1858_v46 = vrot.slane %v1830_v38, %v5793_v8 }
  0xf2   :  { %4007 = vmatpush1.bf16.xpose.msra.mxu0 %v1761_v63  ;;  %4038 = vmatprep.mubr.bf16.mxu0 %v722_v0  ;;  %v1879_v0 = vcombine.high %v1877_v61, %v1877_v61 }
  0xf3   :  { %3999 = vmatmul.mubr.bf16.vlgmr.msra.gmra.mrb[84].mxu1 %v713_v47  ;;  %4086 = vmatprep.subr.bf16.mxu0 %v1764_v2  ;;  %v81_v47 = vld [vmem:[#allocation6 + $0xc8] sm:$0xff]  ;;  %v1862_v56 = vcombine.high %v1858_v46, %v1858_v46 }
  0xf4   :  { %4047 = vmatpush1.bf16.xpose.msra.mxu1 %v1746_v3  ;;  %4078 = vmatprep.mubr.bf16.mxu1 %v738_v4  ;;  %v798_v50 = vrot.slane %v81_v47, %v5795_v9  ;;  %v791_v55 = vcombine.high %v81_v47, %v81_v47  ;;  %v110_v4 = vld [vmem:[#allocation2 + $0x70] sm:$0xff] }
  0xf5   :  { %4126 = vmatprep.subr.bf16.mxu1 %v1802_v5  ;;  %v1919_v12 = vrot.slane %v110_v4, %v5793_v8 }
  0xf6   :  { %v806_v58 = vcombine.high %v798_v50, %v798_v50  ;;  %v805_v62 = vrot.slane %v791_v55, %v5795_v9 }
  0xf7   :  { %v1935_v52 = vrot.slane %v1919_v12, %v5793_v8 }
  0xf8   :  { %v807_v2 = vcombine.high %v805_v62, %v805_v62 }
  0xf9   :  { %4039 = vmatmul.mubr.bf16.vlgmr.msra.gmra.mrb[88].mxu0 %v720_v59  ;;  %v1900_v59 = vrot.slane %v1878_v51, %v5793_v8 }
  0xfa   :  { %4087 = vmatpush1.bf16.xpose.msra.mxu0 %v1762_v13  ;;  %4118 = vmatprep.mubr.bf16.mxu0 %v739_v14 }
  0xfb   :  { %4079 = vmatmul.mubr.bf16.vlgmr.msra.gmra.mrb[88].mxu1 %v730_v60  ;;  %4166 = vmatprep.subr.bf16.mxu0 %v1812_v17  ;;  %v82_v60 = vld [vmem:[#allocation6 + $0xd0] sm:$0xff]  ;;  %v1910_v5 = vcombine.high %v1900_v59, %v1900_v59  ;;  %v1927_v17 = vcombine.high %v1919_v12, %v1919_v12 }
  0xfc   :  { %4127 = vmatpush1.bf16.xpose.msra.mxu1 %v1788_v18  ;;  %4158 = vmatprep.mubr.bf16.mxu1 %v755_v19  ;;  %v815_v63 = vrot.slane %v82_v60, %v5795_v9  ;;  %v808_v3 = vcombine.high %v82_v60, %v82_v60  ;;  %v1912_v18 = vcombine.high %v110_v4, %v110_v4 }
  0xfd   :  { %4206 = vmatprep.subr.bf16.mxu1 %v1809_v20 }
  0xfe   :  { %v823_v7 = vcombine.high %v815_v63, %v815_v63  ;;  %v822_v13 = vrot.slane %v808_v3, %v5795_v9  ;;  %v1926_v34 = vrot.slane %v1912_v18, %v5793_v8  ;;  %v1957_v3 = vcombine.high %v1935_v52, %v1935_v52 }
 0x100   :  { %v824_v22 = vcombine.high %v822_v13, %v822_v13 }
 0x101   :  { %4119 = vmatmul.mubr.bf16.vlgmr.msra.gmra.mrb[92].mxu0 %v737_v10  ;;  %v1907_v10 = vrot.slane %v1879_v0, %v5793_v8 }
 0x102   :  { %4167 = vmatpush1.bf16.xpose.msra.mxu0 %v1810_v27  ;;  %4198 = vmatprep.mubr.bf16.mxu0 %v756_v28 }
 0x103   :  { %4159 = vmatmul.mubr.bf16.vlgmr.msra.gmra.mrb[92].mxu1 %v747_v11  ;;  %4246 = vmatprep.subr.bf16.mxu0 %v1813_v30  ;;  %v83_v11 = vld [vmem:[#allocation6 + $0xd8] sm:$0xff]  ;;  %v1911_v27 = vcombine.high %v1907_v10, %v1907_v10 }
 0x104   :  { %4207 = vmatpush1.bf16.xpose.msra.mxu1 %v1795_v31  ;;  %4238 = vmatprep.mubr.bf16.mxu1 %v772_v32  ;;  %v832_v15 = vrot.slane %v83_v11, %v5795_v9  ;;  %v1949_v32 = vrot.slane %v1927_v17, %v5793_v8  ;;  %v86_v17 = vld [vmem:[#allocation6 + $0xf0] sm:$0xff] }
 0x105   :  { %4286 = vmatprep.subr.bf16.mxu1 %v1851_v33  ;;  %v84_v33 = vld [vmem:[#allocation6 + $0xe0] sm:$0xff] }
 0x106   :  { %v840_v30 = vcombine.high %v832_v15, %v832_v15 }
 0x109   :  { %4199 = vmatmul.mubr.bf16.vlgmr.msra.gmra.mrb[96].mxu0 %v754_v23  ;;  %v825_v23 = vcombine.high %v83_v11, %v83_v11 }
 0x10a   :  { %4247 = vmatpush1.bf16.xpose.msra.mxu0 %v1811_v39  ;;  %4278 = vmatprep.mubr.bf16.mxu0 %v773_v40  ;;  %v1928_v40 = vcombine.high %v1926_v34, %v1926_v34 }
 0x10b   :  { %4239 = vmatmul.mubr.bf16.vlgmr.msra.gmra.mrb[96].mxu1 %v764_v24  ;;  %4326 = vmatprep.subr.bf16.mxu0 %v1861_v43  ;;  %v839_v35 = vrot.slane %v825_v23, %v5795_v9  ;;  %v1909_v43 = vcombine.high %v1893_v29, %v1893_v29 }
 0x10c   :  { %4287 = vmatpush1.bf16.xpose.msra.mxu1 %v1837_v44  ;;  %4318 = vmatprep.mubr.bf16.mxu1 %v789_v45  ;;  %v842_v45 = vcombine.high %v84_v33, %v84_v33  ;;  %v1956_v55 = vrot.slane %v1928_v40, %v5793_v8  ;;  %v87_v40 = vld [vmem:[#allocation6 + $0xf8] sm:$0xff] }
 0x10d   :  { %4366 = vmatprep.subr.bf16.mxu1 %v1858_v46  ;;  %v841_v44 = vcombine.high %v839_v35, %v839_v35  ;;  %v111_v46 = vld [vmem:[#allocation2 + $0x78] sm:$0xff] }
 0x10e   :  { %v1961_v0 = vcombine.high %v111_v46, %v111_v46  ;;  %v1960_v11 = vcombine.high %v1956_v55, %v1956_v55 }
 0x110   :  { %v1975_v18 = vrot.slane %v1961_v0, %v5793_v8 }
 0x111   :  { %4279 = vmatmul.mubr.bf16.vlgmr.msra.gmra.mrb[100].mxu0 %v771_v36 }
 0x112   :  { %4327 = vmatpush1.bf16.xpose.msra.mxu0 %v1859_v53  ;;  %4358 = vmatprep.mubr.bf16.mxu0 %v790_v54 }
 0x113   :  { %4319 = vmatmul.mubr.bf16.vlgmr.msra.gmra.mrb[100].mxu1 %v781_v37  ;;  %4406 = vmatprep.subr.bf16.mxu0 %v1862_v56  ;;  %v849_v37 = vrot.slane %v84_v33, %v5795_v9  ;;  %v85_v56 = vld [vmem:[#allocation6 + $0xe8] sm:$0xff] }
 0x114   :  { %4367 = vmatpush1.bf16.xpose.msra.mxu1 %v1844_v57  ;;  %4398 = vmatprep.mubr.bf16.mxu1 %v806_v58  ;;  %v1968_v57 = vrot.slane %v111_v46, %v5793_v8  ;;  %v856_v58 = vrot.slane %v842_v45, %v5795_v9  ;;  %v866_v60 = vrot.slane %v85_v56, %v5795_v9 }
 0x115   :  { %4446 = vmatprep.subr.bf16.mxu1 %v1900_v59  ;;  %v857_v53 = vcombine.high %v849_v37, %v849_v37 }
 0x116   :  { %v858_v4 = vcombine.high %v856_v58, %v856_v58 }
 0x119   :  { %4359 = vmatmul.mubr.bf16.vlgmr.msra.gmra.mrb[104].mxu0 %v788_v49 }
 0x11a   :  { %4407 = vmatpush1.bf16.xpose.msra.mxu0 %v1860_v1  ;;  %4438 = vmatprep.mubr.bf16.mxu0 %v807_v2 }
 0x11b   :  { %4399 = vmatmul.mubr.bf16.vlgmr.msra.gmra.mrb[104].mxu1 %v798_v50  ;;  %4486 = vmatprep.subr.bf16.mxu0 %v1910_v5  ;;  %v1959_v50 = vcombine.high %v1949_v32, %v1949_v32  ;;  %v859_v5 = vcombine.high %v85_v56, %v85_v56 }
 0x11c   :  { %v240_v14 = vpop.f32.mrb[0].mxu0  ;;  %4447 = vmatpush1.bf16.xpose.msra.mxu1 %v1886_v6  ;;  %4478 = vmatprep.mubr.bf16.mxu1 %v823_v7 }
 0x11d   :  { %v242_v16 = vpop.f32.mrb[1].mxu0  ;;  %4526 = vmatprep.subr.bf16.mxu1 %v1907_v10 }
 0x11e   :  { %v243_v19 = vpop.f32.mrb[2].mxu0  ;;  %v280_v20 = vpop.f32.mrb[0].mxu1 }
 0x11f   :  { %v281_v24 = vadd.f32 %v280_v20, %v240_v14  ;;  %v244_v25 = vpop.f32.mrb[3].mxu0  ;;  %v282_v26 = vpop.f32.mrb[1].mxu1  ;;  %v874_v14 = vcombine.high %v866_v60, %v866_v60  ;;  %v873_v19 = vrot.slane %v859_v5, %v5795_v9 }
 0x120   :  { %v283_v28 = vpop.f32.mrb[2].mxu1 }
 0x121   :  { %4439 = vmatmul.mubr.bf16.vlgmr.msra.gmra.mrb[108].mxu0 %v805_v62  ;;  %v284_v31 = vpop.f32.mrb[3].mxu1  ;;  %v875_v28 = vcombine.high %v873_v19, %v873_v19 }
 0x122   :  { %4487 = vmatpush1.bf16.xpose.msra.mxu0 %v1908_v21  ;;  %4518 = vmatprep.mubr.bf16.mxu0 %v824_v22  ;;  %v883_v21 = vrot.slane %v86_v17, %v5795_v9 }
 0x123   :  { %4479 = vmatmul.mubr.bf16.vlgmr.msra.gmra.mrb[108].mxu1 %v815_v63  ;;  %4566 = vmatprep.subr.bf16.mxu0 %v1911_v27  ;;  %v1976_v63 = vcombine.high %v1968_v57, %v1968_v57 }
 0x124   :  { %v320_v36 = vpop.f32.mrb[4].mxu0  ;;  %4527 = vmatpush1.bf16.xpose.msra.mxu1 %v1893_v29  ;;  %4558 = vmatprep.mubr.bf16.mxu1 %v840_v30  ;;  %v876_v29 = vcombine.high %v86_v17, %v86_v17  ;;  %v112_v30 = vld [vmem:[#allocation2 + $0x80] sm:$0xff] }
 0x125   :  { %v321_v38 = vadd.f32 %v320_v36, %v281_v24  ;;  %v322_v39 = vpop.f32.mrb[5].mxu0  ;;  %4606 = vmatprep.subr.bf16.mxu1 %v1949_v32  ;;  %v1998_v16 = vrot.slane %v1976_v63, %v5793_v8  ;;  %v1977_v24 = vcombine.high %v1975_v18, %v1975_v18  ;;  %v1984_v36 = vrot.slane %v1968_v57, %v5793_v8  ;;  %v88_v63 = vld [vmem:[#allocation6 + $0x100] sm:$0xff] }
 0x126   :  { %v323_v41 = vpop.f32.mrb[6].mxu0  ;;  %v2400_v42 = vpop.f32.mrb[4].mxu1 }
 0x127   :  { %v2401_v47 = vadd.f32 %v2400_v42, %v321_v38  ;;  %v324_v48 = vpop.f32.mrb[7].mxu0  ;;  %v2402_v49 = vpop.f32.mrb[5].mxu1  ;;  %v2005_v39 = vrot.slane %v1977_v24, %v5793_v8  ;;  %v2017_v41 = vrot.slane %v112_v30, %v5793_v8  ;;  %v890_v42 = vrot.slane %v876_v29, %v5795_v9  ;;  %v89_v24 = vld [vmem:[#allocation6 + $0x108] sm:$0xff] }
 0x128   :  { %v2403_v51 = vpop.f32.mrb[6].mxu1  ;;  %v2010_v48 = vcombine.high %v112_v30, %v112_v30 }
 0x129   :  { %4519 = vmatmul.mubr.bf16.vlgmr.msra.gmra.mrb[112].mxu0 %v822_v13  ;;  %v2404_v54 = vpop.f32.mrb[7].mxu1  ;;  %v1942_v13 = vrot.slane %v1926_v34, %v5793_v8  ;;  %v2008_v34 = vcombine.high %v1998_v16, %v1998_v16  ;;  %v2006_v51 = vcombine.high %v1984_v36, %v1984_v36  ;;  %v2009_v57 = vcombine.high %v2005_v39, %v2005_v39 }
 0x12a   :  { %4567 = vmatpush1.bf16.xpose.msra.mxu0 %v1909_v43  ;;  %4598 = vmatprep.mubr.bf16.mxu0 %v841_v44  ;;  %v900_v44 = vrot.slane %v87_v40, %v5795_v9  ;;  %v2024_v0 = vrot.slane %v2010_v48, %v5793_v8 }
 0x12b   :  { %4559 = vmatmul.mubr.bf16.vlgmr.msra.gmra.mrb[112].mxu1 %v832_v15  ;;  %4646 = vmatprep.subr.bf16.mxu0 %v1959_v50  ;;  %v1958_v27 = vcombine.high %v1942_v13, %v1942_v13 }
 0x12c   :  { %v2440_v59 = vpop.f32.mrb[8].mxu0  ;;  %4607 = vmatpush1.bf16.xpose.msra.mxu1 %v1935_v52  ;;  %4638 = vmatprep.mubr.bf16.mxu1 %v857_v53  ;;  %v892_v52 = vcombine.high %v890_v42, %v890_v42  ;;  %v893_v53 = vcombine.high %v87_v40, %v87_v40 }
 0x12d   :  { %v2441_v61 = vadd.f32 %v2440_v59, %v2401_v47  ;;  %v2442_v62 = vpop.f32.mrb[9].mxu0  ;;  %4686 = vmatprep.subr.bf16.mxu1 %v1956_v55  ;;  %v2025_v47 = vcombine.high %v2017_v41, %v2017_v41  ;;  %v1991_v59 = vrot.slane %v1975_v18, %v5793_v8 }
 0x12e   :  { %v2443_v1 = vpop.f32.mrb[10].mxu0  ;;  %v2480_v2 = vpop.f32.mrb[8].mxu1 }
 0x12f   :  { %v2481_v6 = vadd.f32 %v2480_v2, %v2441_v61  ;;  %v2444_v7 = vpop.f32.mrb[11].mxu0  ;;  %v2482_v10 = vpop.f32.mrb[9].mxu1  ;;  %v2047_v62 = vrot.slane %v2025_v47, %v5793_v8  ;;  %v907_v1 = vrot.slane %v893_v53, %v5795_v9  ;;  %v90_v47 = vld [vmem:[#allocation6 + $0x110] sm:$0xff] }
 0x130   :  { %v2483_v12 = vpop.f32.mrb[10].mxu1 }
 0x131   :  { %4599 = vmatmul.mubr.bf16.vlgmr.msra.gmra.mrb[116].mxu0 %v839_v35  ;;  %v2484_v15 = vpop.f32.mrb[11].mxu1  ;;  %v909_v12 = vcombine.high %v907_v1, %v907_v1  ;;  %v2057_v18 = vcombine.high %v2047_v62, %v2047_v62 }
 0x132   :  { %4647 = vmatpush1.bf16.xpose.msra.mxu0 %v1957_v3  ;;  %4678 = vmatprep.mubr.bf16.mxu0 %v858_v4  ;;  %v917_v3 = vrot.slane %v88_v63, %v5795_v9 }
 0x133   :  { %4639 = vmatmul.mubr.bf16.vlgmr.msra.gmra.mrb[116].mxu1 %v849_v37  ;;  %4726 = vmatprep.subr.bf16.mxu0 %v1960_v11  ;;  %v891_v37 = vcombine.high %v883_v21, %v883_v21  ;;  %v2007_v11 = vcombine.high %v1991_v59, %v1991_v59 }
 0x134   :  { %v2520_v20 = vpop.f32.mrb[12].mxu0  ;;  %4687 = vmatpush1.bf16.xpose.msra.mxu1 %v1942_v13  ;;  %4718 = vmatprep.mubr.bf16.mxu1 %v874_v14  ;;  %v910_v13 = vcombine.high %v88_v63, %v88_v63  ;;  %v113_v14 = vld [vmem:[#allocation2 + $0x88] sm:$0xff] }
 0x135   :  { %v2521_v22 = vadd.f32 %v2520_v20, %v2481_v6  ;;  %v2522_v23 = vpop.f32.mrb[13].mxu0  ;;  %4766 = vmatprep.subr.bf16.mxu1 %v1998_v16  ;;  %v2026_v6 = vcombine.high %v2024_v0, %v2024_v0  ;;  %v2033_v20 = vrot.slane %v2017_v41, %v5793_v8 }
 0x136   :  { %v2523_v25 = vpop.f32.mrb[14].mxu0  ;;  %v2560_v26 = vpop.f32.mrb[12].mxu1 }
 0x137   :  { %v2561_v31 = vadd.f32 %v2560_v26, %v2521_v22  ;;  %v2524_v32 = vpop.f32.mrb[15].mxu0  ;;  %v2562_v33 = vpop.f32.mrb[13].mxu1  ;;  %v2054_v23 = vrot.slane %v2026_v6, %v5793_v8  ;;  %v2066_v25 = vrot.slane %v113_v14, %v5793_v8  ;;  %v924_v26 = vrot.slane %v910_v13, %v5795_v9  ;;  %v91_v6 = vld [vmem:[#allocation6 + $0x118] sm:$0xff] }
 0x138   :  { %v2563_v35 = vpop.f32.mrb[14].mxu1  ;;  %v2059_v32 = vcombine.high %v113_v14, %v113_v14 }
 0x139   :  { %4679 = vmatmul.mubr.bf16.vlgmr.msra.gmra.mrb[120].mxu0 %v856_v58  ;;  %v2564_v38 = vpop.f32.mrb[15].mxu1  ;;  %v2055_v35 = vcombine.high %v2033_v20, %v2033_v20  ;;  %v2058_v41 = vcombine.high %v2054_v23, %v2054_v23 }
 0x13a   :  { %4727 = vmatpush1.bf16.xpose.msra.mxu0 %v1958_v27  ;;  %4758 = vmatprep.mubr.bf16.mxu0 %v875_v28  ;;  %v934_v28 = vrot.slane %v89_v24, %v5795_v9  ;;  %v2073_v48 = vrot.slane %v2059_v32, %v5793_v8 }
 0x13b   :  { %4719 = vmatmul.mubr.bf16.vlgmr.msra.gmra.mrb[120].mxu1 %v866_v60  ;;  %4806 = vmatprep.subr.bf16.mxu0 %v2008_v34  ;;  %v908_v60 = vcombine.high %v900_v44, %v900_v44 }
 0x13c   :  { %v2600_v43 = vpop.f32.mrb[16].mxu0  ;;  %4767 = vmatpush1.bf16.xpose.msra.mxu1 %v1984_v36  ;;  %4798 = vmatprep.mubr.bf16.mxu1 %v891_v37  ;;  %v926_v36 = vcombine.high %v924_v26, %v924_v26  ;;  %v927_v37 = vcombine.high %v89_v24, %v89_v24 }
 0x13d   :  { %v2601_v45 = vadd.f32 %v2600_v43, %v2561_v31  ;;  %v2602_v46 = vpop.f32.mrb[17].mxu0  ;;  %4846 = vmatprep.subr.bf16.mxu1 %v2005_v39  ;;  %v2074_v31 = vcombine.high %v2066_v25, %v2066_v25  ;;  %v2040_v43 = vrot.slane %v2024_v0, %v5793_v8 }
 0x13e   :  { %v2603_v49 = vpop.f32.mrb[18].mxu0  ;;  %v2640_v50 = vpop.f32.mrb[16].mxu1 }
 0x13f   :  { %v2641_v54 = vadd.f32 %v2640_v50, %v2601_v45  ;;  %v2604_v55 = vpop.f32.mrb[19].mxu0  ;;  %v2642_v56 = vpop.f32.mrb[17].mxu1  ;;  %v2096_v46 = vrot.slane %v2074_v31, %v5793_v8  ;;  %v941_v49 = vrot.slane %v927_v37, %v5795_v9  ;;  %v92_v31 = vld [vmem:[#allocation6 + $0x120] sm:$0xff] }
 0x140   :  { %v2643_v58 = vpop.f32.mrb[18].mxu1 }
 0x141   :  { %4759 = vmatmul.mubr.bf16.vlgmr.msra.gmra.mrb[124].mxu0 %v873_v19  ;;  %v2644_v61 = vpop.f32.mrb[19].mxu1  ;;  %v943_v58 = vcombine.high %v941_v49, %v941_v49  ;;  %v2106_v0 = vcombine.high %v2096_v46, %v2096_v46 }
 0x142   :  { %4807 = vmatpush1.bf16.xpose.msra.mxu0 %v2006_v51  ;;  %4838 = vmatprep.mubr.bf16.mxu0 %v892_v52  ;;  %v951_v51 = vrot.slane %v90_v47, %v5795_v9 }
 0x143   :  { %4799 = vmatmul.mubr.bf16.vlgmr.msra.gmra.mrb[124].mxu1 %v883_v21  ;;  %4886 = vmatprep.subr.bf16.mxu0 %v2009_v57  ;;  %v925_v21 = vcombine.high %v917_v3, %v917_v3  ;;  %v2056_v57 = vcombine.high %v2040_v43, %v2040_v43 }
 0x144   :  { %v2680_v2 = vpop.f32.mrb[20].mxu0  ;;  %4847 = vmatpush1.bf16.xpose.msra.mxu1 %v1991_v59  ;;  %4878 = vmatprep.mubr.bf16.mxu1 %v908_v60  ;;  %v944_v59 = vcombine.high %v90_v47, %v90_v47  ;;  %v114_v60 = vld [vmem:[#allocation2 + $0x90] sm:$0xff] }
 0x145   :  { %v2681_v4 = vadd.f32 %v2680_v2, %v2641_v54  ;;  %v2682_v5 = vpop.f32.mrb[21].mxu0  ;;  %4926 = vmatprep.subr.bf16.mxu1 %v2047_v62  ;;  %v2075_v54 = vcombine.high %v2073_v48, %v2073_v48  ;;  %v2082_v2 = vrot.slane %v2066_v25, %v5793_v8 }
 0x146   :  { %v2683_v7 = vpop.f32.mrb[22].mxu0  ;;  %v2720_v10 = vpop.f32.mrb[20].mxu1 }
 0x147   :  { %v2721_v15 = vadd.f32 %v2720_v10, %v2681_v4  ;;  %v2684_v16 = vpop.f32.mrb[23].mxu0  ;;  %v2722_v17 = vpop.f32.mrb[21].mxu1  ;;  %v2103_v5 = vrot.slane %v2075_v54, %v5793_v8  ;;  %v2115_v7 = vrot.slane %v114_v60, %v5793_v8  ;;  %v958_v10 = vrot.slane %v944_v59, %v5795_v9 }
 0x148   :  { %v2723_v19 = vpop.f32.mrb[22].mxu1  ;;  %v2108_v16 = vcombine.high %v114_v60, %v114_v60 }
 0x149   :  { %4839 = vmatmul.mubr.bf16.vlgmr.msra.gmra.mrb[128].mxu0 %v890_v42  ;;  %v2724_v22 = vpop.f32.mrb[23].mxu1  ;;  %v2104_v19 = vcombine.high %v2082_v2, %v2082_v2  ;;  %v2107_v25 = vcombine.high %v2103_v5, %v2103_v5 }
 0x14a   :  { %4887 = vmatpush1.bf16.xpose.msra.mxu0 %v2007_v11  ;;  %4918 = vmatprep.mubr.bf16.mxu0 %v909_v12  ;;  %v968_v12 = vrot.slane %v91_v6, %v5795_v9  ;;  %v2122_v32 = vrot.slane %v2108_v16, %v5793_v8 }
 0x14b   :  { %4879 = vmatmul.mubr.bf16.vlgmr.msra.gmra.mrb[128].mxu1 %v900_v44  ;;  %4966 = vmatprep.subr.bf16.mxu0 %v2057_v18  ;;  %v942_v44 = vcombine.high %v934_v28, %v934_v28 }
 0x14c   :  { %v2760_v27 = vpop.f32.mrb[24].mxu0  ;;  %4927 = vmatpush1.bf16.xpose.msra.mxu1 %v2033_v20  ;;  %4958 = vmatprep.mubr.bf16.mxu1 %v925_v21  ;;  %v960_v20 = vcombine.high %v958_v10, %v958_v10  ;;  %v961_v21 = vcombine.high %v91_v6, %v91_v6 }
 0x14d   :  { %v2761_v29 = vadd.f32 %v2760_v27, %v2721_v15  ;;  %v2762_v30 = vpop.f32.mrb[25].mxu0  ;;  %5006 = vmatprep.subr.bf16.mxu1 %v2054_v23  ;;  %v2123_v15 = vcombine.high %v2115_v7, %v2115_v7  ;;  %v2089_v27 = vrot.slane %v2073_v48, %v5793_v8 }
 0x14e   :  { %v2763_v33 = vpop.f32.mrb[26].mxu0  ;;  %v2800_v34 = vpop.f32.mrb[24].mxu1 }
 0x14f   :  { %v2801_v38 = vadd.f32 %v2800_v34, %v2761_v29  ;;  %v2764_v39 = vpop.f32.mrb[27].mxu0  ;;  %v2802_v40 = vpop.f32.mrb[25].mxu1  ;;  %v2145_v30 = vrot.slane %v2123_v15, %v5793_v8  ;;  %v975_v33 = vrot.slane %v961_v21, %v5795_v9 }
 0x150   :  { %v2803_v42 = vpop.f32.mrb[26].mxu1 }
 0x151   :  { %4919 = vmatmul.mubr.bf16.vlgmr.msra.gmra.mrb[132].mxu0 %v907_v1  ;;  %v2804_v45 = vpop.f32.mrb[27].mxu1  ;;  %v977_v42 = vcombine.high %v975_v33, %v975_v33 }
 0x152   :  { %4967 = vmatpush1.bf16.xpose.msra.mxu0 %v2055_v35  ;;  %4998 = vmatprep.mubr.bf16.mxu0 %v926_v36  ;;  %v985_v35 = vrot.slane %v92_v31, %v5795_v9  ;;  %v5726_v45 = vmov 0  }
 0x153   :  { %4959 = vmatmul.mubr.bf16.vlgmr.msra.gmra.mrb[132].mxu1 %v917_v3  ;;  %5046 = vmatprep.subr.bf16.mxu0 %v2058_v41  ;;  %v959_v3 = vcombine.high %v951_v51, %v951_v51  ;;  %v2105_v41 = vcombine.high %v2089_v27, %v2089_v27 }
 0x154   :  { %v2840_v50 = vpop.f32.mrb[28].mxu0  ;;  %5007 = vmatpush1.bf16.xpose.msra.mxu1 %v2040_v43  ;;  %5038 = vmatprep.mubr.bf16.mxu1 %v942_v44  ;;  %v978_v43 = vcombine.high %v92_v31, %v92_v31  ;;  %v115_v44 = vld [vmem:[#allocation2 + $0x98] sm:$0xff] }
 0x155   :  { %v2841_v52 = vadd.f32 %v2840_v50, %v2801_v38  ;;  %v2842_v53 = vpop.f32.mrb[29].mxu0  ;;  %5086 = vmatprep.subr.bf16.mxu1 %v2096_v46  ;;  %v2124_v38 = vcombine.high %v2122_v32, %v2122_v32  ;;  %5588 = vset.pattern.permute.xlu0 %v5726_v45  ;;  %v5566_v46 = vld [vmem:[%s6021_s4] sm:$0xf]  ;;  %v2155_v50 = vcombine.high %v2145_v30, %v2145_v30 }
 0x156   :  { %v2843_v55 = vpop.f32.mrb[30].mxu0  ;;  %v2880_v56 = vpop.f32.mrb[28].mxu1  ;;  %5569 = vperm.xlu0 %5588, %v5566_v46   ;;  %v993_v53 = vcombine.high %v985_v35, %v985_v35 }
 0x157   :  { %v2881_v61 = vadd.f32 %v2880_v56, %v2841_v52  ;;  %v2844_v62 = vpop.f32.mrb[31].mxu0  ;;  %v2882_v63 = vpop.f32.mrb[29].mxu1  ;;  %v2131_v52 = vrot.slane %v2115_v7, %v5793_v8  ;;  %v2152_v55 = vrot.slane %v2124_v38, %v5793_v8  ;;  %v93_v56 = vld [vmem:[#allocation6 + $0x128] sm:$0xff] }
 0x158   :  { %v2883_v1 = vpop.f32.mrb[30].mxu1  ;;  %v1002_v60 = vrot.slane %v93_v56, %v5795_v9 }
 0x159   :  { %4999 = vmatmul.mubr.bf16.vlgmr.msra.gmra.mrb[136].mxu0 %v924_v26  ;;  %v2884_v4 = vpop.f32.mrb[31].mxu1 }
 0x15a   :  { %5047 = vmatpush1.bf16.xpose.msra.mxu0 %v2056_v57  ;;  %5078 = vmatprep.mubr.bf16.mxu0 %v943_v58  ;;  %v2164_v57 = vrot.slane %v115_v44, %v5793_v8  ;;  %v992_v58 = vrot.slane %v978_v43, %v5795_v9 }
 0x15b   :  { %5039 = vmatmul.mubr.bf16.vlgmr.msra.gmra.mrb[136].mxu1 %v934_v28  ;;  %5126 = vmatprep.subr.bf16.mxu0 %v2106_v0  ;;  %v976_v28 = vcombine.high %v968_v12, %v968_v12  ;;  %v2157_v0 = vcombine.high %v115_v44, %v115_v44 }
 0x15c   :  { %v2920_v11 = vpop.f32.mrb[32].mxu0  ;;  %5087 = vmatpush1.bf16.xpose.msra.mxu1 %v2082_v2  ;;  %5118 = vmatprep.mubr.bf16.mxu1 %v959_v3  ;;  %v2172_v63 = vcombine.high %v2164_v57, %v2164_v57  ;;  %v2153_v3 = vcombine.high %v2131_v52, %v2131_v52  ;;  %v994_v4 = vcombine.high %v992_v58, %v992_v58 }
 0x15d   :  { %v2921_v13 = vadd.f32 %v2920_v11, %v2881_v61  ;;  %v2922_v14 = vpop.f32.mrb[33].mxu0  ;;  %5166 = vmatprep.subr.bf16.mxu1 %v2103_v5  ;;  %v995_v5 = vcombine.high %v93_v56, %v93_v56  ;;  %v2156_v11 = vcombine.high %v2152_v55, %v2152_v55 }
 0x15e   :  { %v2923_v17 = vpop.f32.mrb[34].mxu0  ;;  %v2960_v18 = vpop.f32.mrb[32].mxu1  ;;  %v1010_v14 = vcombine.high %v1002_v60, %v1002_v60  ;;  %v2194_v16 = vrot.slane %v2172_v63, %v5793_v8 }
 0x15f   :  { %v2961_v22 = vadd.f32 %v2960_v18, %v2921_v13  ;;  %v2924_v23 = vpop.f32.mrb[35].mxu0  ;;  %v2962_v24 = vpop.f32.mrb[33].mxu1  ;;  %v2138_v13 = vrot.slane %v2122_v32, %v5793_v8  ;;  %v94_v17 = vld [vmem:[#allocation6 + $0x130] sm:$0xff]  ;;  %v2171_v18 = vrot.slane %v2157_v0, %v5793_v8 }
 0x160   :  { %v2963_v26 = vpop.f32.mrb[34].mxu1  ;;  %v1019_v21 = vrot.slane %v94_v17, %v5795_v9 }
 0x161   :  { %5079 = vmatmul.mubr.bf16.vlgmr.msra.gmra.mrb[140].mxu0 %v941_v49  ;;  %v2964_v29 = vpop.f32.mrb[35].mxu1  ;;  %v2173_v24 = vcombine.high %v2171_v18, %v2171_v18 }
 0x162   :  { %5127 = vmatpush1.bf16.xpose.msra.mxu0 %v2104_v19  ;;  %5158 = vmatprep.mubr.bf16.mxu0 %v960_v20  ;;  %v1009_v19 = vrot.slane %v995_v5, %v5795_v9  ;;  %v1012_v29 = vcombine.high %v94_v17, %v94_v17 }
 0x163   :  { %5119 = vmatmul.mubr.bf16.vlgmr.msra.gmra.mrb[140].mxu1 %v951_v51  ;;  %5206 = vmatprep.subr.bf16.mxu0 %v2107_v25  ;;  %v2201_v38 = vrot.slane %v2173_v24, %v5793_v8 }
 0x164   :  { %v3000_v34 = vpop.f32.mrb[36].mxu0  ;;  %5167 = vmatpush1.bf16.xpose.msra.mxu1 %v2089_v27  ;;  %5198 = vmatprep.mubr.bf16.mxu1 %v976_v28  ;;  %v2154_v27 = vcombine.high %v2138_v13, %v2138_v13  ;;  %v1011_v28 = vcombine.high %v1009_v19, %v1009_v19 }
 0x165   :  { %v3001_v36 = vadd.f32 %v3000_v34, %v2961_v22  ;;  %v3002_v37 = vpop.f32.mrb[37].mxu0  ;;  %5246 = vmatprep.subr.bf16.mxu1 %v2145_v30 }
 0x166   :  { %v3003_v39 = vpop.f32.mrb[38].mxu0  ;;  %v3040_v40 = vpop.f32.mrb[36].mxu1 }
 0x167   :  { %v3041_v47 = vadd.f32 %v3040_v40, %v3001_v36  ;;  %v3004_v48 = vpop.f32.mrb[39].mxu0  ;;  %v3042_v49 = vpop.f32.mrb[37].mxu1  ;;  %v1027_v36 = vcombine.high %v1019_v21, %v1019_v21  ;;  %v95_v39 = vld [vmem:[#allocation6 + $0x138] sm:$0xff]  ;;  %v1026_v40 = vrot.slane %v1012_v29, %v5795_v9 }
 0x168   :  { %v3043_v51 = vpop.f32.mrb[38].mxu1  ;;  %v1029_v49 = vcombine.high %v95_v39, %v95_v39 }
 0x169   :  { %5159 = vmatmul.mubr.bf16.vlgmr.msra.gmra.mrb[144].mxu0 %v958_v10  ;;  %v3044_v54 = vpop.f32.mrb[39].mxu1  ;;  %v1028_v48 = vcombine.high %v1026_v40, %v1026_v40 }
 0x16a   :  { %5207 = vmatpush1.bf16.xpose.msra.mxu0 %v2105_v41  ;;  %5238 = vmatprep.mubr.bf16.mxu0 %v977_v42  ;;  %v1036_v42 = vrot.slane %v95_v39, %v5795_v9 }
 0x16b   :  { %5199 = vmatmul.mubr.bf16.vlgmr.msra.gmra.mrb[144].mxu1 %v968_v12  ;;  %5286 = vmatprep.subr.bf16.mxu0 %v2155_v50 }
 0x16c   :  { %v3080_v59 = vpop.f32.mrb[40].mxu0  ;;  %5247 = vmatpush1.bf16.xpose.msra.mxu1 %v2131_v52  ;;  %5278 = vmatprep.mubr.bf16.mxu1 %v993_v53  ;;  %v2205_v53 = vcombine.high %v2201_v38, %v2201_v38  ;;  %v1044_v56 = vcombine.high %v1036_v42, %v1036_v42 }
 0x16d   :  { %v3081_v61 = vadd.f32 %v3080_v59, %v3041_v47  ;;  %v3082_v62 = vpop.f32.mrb[41].mxu0  ;;  %5326 = vmatprep.subr.bf16.mxu1 %v2152_v55  ;;  %v2187_v55 = vrot.slane %v2171_v18, %v5793_v8 }
 0x16e   :  { %v3083_v1 = vpop.f32.mrb[42].mxu0  ;;  %v3120_v2 = vpop.f32.mrb[40].mxu1 }
 0x16f   :  { %v3121_v6 = vadd.f32 %v3120_v2, %v3081_v61  ;;  %v3084_v7 = vpop.f32.mrb[43].mxu0  ;;  %v3122_v10 = vpop.f32.mrb[41].mxu1  ;;  %v2203_v0 = vcombine.high %v2187_v55, %v2187_v55 }
 0x170   :  { %v3123_v12 = vpop.f32.mrb[42].mxu1 }
 0x171   :  { %5239 = vmatmul.mubr.bf16.vlgmr.msra.gmra.mrb[148].mxu0 %v975_v33  ;;  %v3124_v15 = vpop.f32.mrb[43].mxu1  ;;  %v2204_v33 = vcombine.high %v2194_v16, %v2194_v16 }
 0x172   :  { %5287 = vmatpush1.bf16.xpose.msra.mxu0 %v2153_v3  ;;  %5318 = vmatprep.mubr.bf16.mxu0 %v994_v4 }
 0x173   :  { %5279 = vmatmul.mubr.bf16.vlgmr.msra.gmra.mrb[148].mxu1 %v985_v35  ;;  %5366 = vmatprep.subr.bf16.mxu0 %v2156_v11  ;;  %v2180_v35 = vrot.slane %v2164_v57, %v5793_v8 }
 0x174   :  { %v3160_v20 = vpop.f32.mrb[44].mxu0  ;;  %5327 = vmatpush1.bf16.xpose.msra.mxu1 %v2138_v13  ;;  %5358 = vmatprep.mubr.bf16.mxu1 %v1010_v14 }
 0x175   :  { %v3161_v22 = vadd.f32 %v3160_v20, %v3121_v6  ;;  %v3162_v23 = vpop.f32.mrb[45].mxu0  ;;  %5406 = vmatprep.subr.bf16.mxu1 %v2194_v16  ;;  %v2202_v47 = vcombine.high %v2180_v35, %v2180_v35 }
 0x176   :  { %v3163_v25 = vpop.f32.mrb[46].mxu0  ;;  %v3200_v26 = vpop.f32.mrb[44].mxu1 }
 0x177   :  { %v3201_v30 = vadd.f32 %v3200_v26, %v3161_v22  ;;  %v3164_v31 = vpop.f32.mrb[47].mxu0  ;;  %v3202_v32 = vpop.f32.mrb[45].mxu1 }
 0x178   :  { %v3203_v34 = vpop.f32.mrb[46].mxu1 }
 0x179   :  { %5319 = vmatmul.mubr.bf16.vlgmr.msra.gmra.mrb[152].mxu0 %v992_v58  ;;  %v3204_v37 = vpop.f32.mrb[47].mxu1  ;;  %v1043_v58 = vrot.slane %v1029_v49, %v5795_v9 }
 0x17a   :  { %5367 = vmatpush1.bf16.xpose.msra.mxu0 %v2154_v27  ;;  %5398 = vmatprep.mubr.bf16.mxu0 %v1011_v28 }
 0x17b   :  { %5359 = vmatmul.mubr.bf16.vlgmr.msra.gmra.mrb[152].mxu1 %v1002_v60  ;;  %5446 = vmatprep.subr.bf16.mxu0 %v2204_v33  ;;  %v1045_v1 = vcombine.high %v1043_v58, %v1043_v58 }
 0x17c   :  { %v3240_v41 = vpop.f32.mrb[48].mxu0  ;;  %5407 = vmatpush1.bf16.xpose.msra.mxu1 %v2180_v35  ;;  %5438 = vmatprep.mubr.bf16.mxu1 %v1027_v36 }
 0x17d   :  { %v3241_v43 = vadd.f32 %v3240_v41, %v3201_v30  ;;  %v3242_v44 = vpop.f32.mrb[49].mxu0  ;;  %5486 = vmatprep.subr.bf16.mxu1 %v2201_v38 }
 0x17e   :  { %v3243_v45 = vpop.f32.mrb[50].mxu0  ;;  %v3280_v46 = vpop.f32.mrb[48].mxu1 }
 0x17f   :  { %v3281_v50 = vadd.f32 %v3280_v46, %v3241_v43  ;;  %v3244_v51 = vpop.f32.mrb[51].mxu0  ;;  %v3282_v52 = vpop.f32.mrb[49].mxu1 }
 0x180   :  { %v3283_v54 = vpop.f32.mrb[50].mxu1 }
 0x181   :  { %5399 = vmatmul.mubr.bf16.vlgmr.msra.gmra.mrb[156].mxu0 %v1009_v19  ;;  %v3284_v57 = vpop.f32.mrb[51].mxu1 }
 0x182   :  { %5447 = vmatpush1.bf16.xpose.msra.mxu0 %v2202_v47  ;;  %5478 = vmatprep.mubr.bf16.mxu0 %v1028_v48 }
 0x183   :  { %5439 = vmatmul.mubr.bf16.vlgmr.msra.gmra.mrb[156].mxu1 %v1019_v21  ;;  %5526 = vmatprep.subr.bf16.mxu0 %v2205_v53 }
 0x184   :  { %v3320_v59 = vpop.f32.mrb[52].mxu0  ;;  %5487 = vmatpush1.bf16.xpose.msra.mxu1 %v2187_v55  ;;  %5518 = vmatprep.mubr.bf16.mxu1 %v1044_v56 }
 0x185   :  { %v3321_v60 = vadd.f32 %v3320_v59, %v3281_v50  ;;  %v3322_v61 = vpop.f32.mrb[53].mxu0 }
 0x186   :  { %v3323_v62 = vpop.f32.mrb[54].mxu0  ;;  %v3360_v63 = vpop.f32.mrb[52].mxu1 }
 0x187   :  { %v3361_v2 = vadd.f32 %v3360_v63, %v3321_v60  ;;  %v3324_v8 = vpop.f32.mrb[55].mxu0  ;;  %v3362_v3 = vpop.f32.mrb[53].mxu1 }
 0x188   :  { %v3363_v4 = vpop.f32.mrb[54].mxu1 }
 0x189   :  { %5479 = vmatmul.mubr.bf16.vlgmr.msra.gmra.mrb[160].mxu0 %v1026_v40  ;;  %v3364_v5 = vpop.f32.mrb[55].mxu1 }
 0x18a   :  { %5527 = vmatpush1.bf16.xpose.msra.mxu0 %v2203_v0  ;;  %5558 = vmatprep.mubr.bf16.mxu0 %v1045_v1 }
 0x18b   :  { %5519 = vmatmul.mubr.bf16.vlgmr.msra.gmra.mrb[160].mxu1 %v1036_v42 }
 0x18c   :  { %v3400_v9 = vpop.f32.mrb[56].mxu0 }
 0x18d   :  { %v3401_v6 = vadd.f32 %v3400_v9, %v3361_v2  ;;  %v3402_v7 = vpop.f32.mrb[57].mxu0 }
 0x18e   :  { %v3403_v10 = vpop.f32.mrb[58].mxu0  ;;  %v3440_v11 = vpop.f32.mrb[56].mxu1 }
 0x18f   :  { %v3441_v12 = vadd.f32 %v3440_v11, %v3401_v6  ;;  %v3404_v13 = vpop.f32.mrb[59].mxu0  ;;  %v3442_v14 = vpop.f32.mrb[57].mxu1 }
 0x190   :  { %v3443_v15 = vpop.f32.mrb[58].mxu1 }
 0x191   :  { %5559 = vmatmul.mubr.bf16.vlgmr.msra.gmra.mrb[164].mxu0 %v1043_v58  ;;  %v3444_v16 = vpop.f32.mrb[59].mxu1 }
 0x194   :  { %v3480_v17 = vpop.f32.mrb[60].mxu0 }
 0x195   :  { %v3481_v18 = vadd.f32 %v3480_v17, %v3441_v12  ;;  %v3482_v19 = vpop.f32.mrb[61].mxu0 }
 0x196   :  { %v3483_v20 = vpop.f32.mrb[62].mxu0  ;;  %v3520_v21 = vpop.f32.mrb[60].mxu1 }
 0x197   :  { %v3521_v22 = vadd.f32 %v3520_v21, %v3481_v18  ;;  %v3484_v23 = vpop.f32.mrb[63].mxu0  ;;  %v3522_v24 = vpop.f32.mrb[61].mxu1 }
 0x198   :  { %v3523_v25 = vpop.f32.mrb[62].mxu1 }
 0x199   :  { %v3524_v26 = vpop.f32.mrb[63].mxu1 }
 0x19c   :  { %v3560_v27 = vpop.f32.mrb[64].mxu0 }
 0x19d   :  { %v3561_v28 = vadd.f32 %v3560_v27, %v3521_v22  ;;  %v3562_v29 = vpop.f32.mrb[65].mxu0 }
 0x19e   :  { %v3563_v30 = vpop.f32.mrb[66].mxu0  ;;  %v3600_v31 = vpop.f32.mrb[64].mxu1 }
 0x19f   :  { %v3601_v32 = vadd.f32 %v3600_v31, %v3561_v28  ;;  %v3564_v33 = vpop.f32.mrb[67].mxu0  ;;  %v3602_v34 = vpop.f32.mrb[65].mxu1 }
 0x1a0   :  { %v3603_v35 = vpop.f32.mrb[66].mxu1 }
 0x1a1   :  { %v3604_v36 = vpop.f32.mrb[67].mxu1 }
 0x1a4   :  { %v3640_v37 = vpop.f32.mrb[68].mxu0 }
 0x1a5   :  { %v3641_v38 = vadd.f32 %v3640_v37, %v3601_v32  ;;  %v3642_v39 = vpop.f32.mrb[69].mxu0 }
 0x1a6   :  { %v3643_v40 = vpop.f32.mrb[70].mxu0  ;;  %v3680_v41 = vpop.f32.mrb[68].mxu1 }
 0x1a7   :  { %v3681_v42 = vadd.f32 %v3680_v41, %v3641_v38  ;;  %v3644_v43 = vpop.f32.mrb[71].mxu0  ;;  %v3682_v44 = vpop.f32.mrb[69].mxu1 }
 0x1a8   :  { %v3683_v45 = vpop.f32.mrb[70].mxu1 }
 0x1a9   :  { %v3684_v46 = vpop.f32.mrb[71].mxu1 }
 0x1ac   :  { %v3720_v47 = vpop.f32.mrb[72].mxu0 }
 0x1ad   :  { %v3721_v48 = vadd.f32 %v3720_v47, %v3681_v42  ;;  %v3722_v49 = vpop.f32.mrb[73].mxu0 }
 0x1ae   :  { %v3723_v50 = vpop.f32.mrb[74].mxu0  ;;  %v3760_v51 = vpop.f32.mrb[72].mxu1 }
 0x1af   :  { %v3761_v52 = vadd.f32 %v3760_v51, %v3721_v48  ;;  %v3724_v53 = vpop.f32.mrb[75].mxu0  ;;  %v3762_v54 = vpop.f32.mrb[73].mxu1 }
 0x1b0   :  { %v3763_v55 = vpop.f32.mrb[74].mxu1 }
 0x1b1   :  { %v3764_v56 = vpop.f32.mrb[75].mxu1 }
 0x1b4   :  { %v3800_v57 = vpop.f32.mrb[76].mxu0 }
 0x1b5   :  { %v3801_v58 = vadd.f32 %v3800_v57, %v3761_v52  ;;  %v3802_v59 = vpop.f32.mrb[77].mxu0 }
 0x1b6   :  { %v3803_v60 = vpop.f32.mrb[78].mxu0  ;;  %v3840_v61 = vpop.f32.mrb[76].mxu1 }
 0x1b7   :  { %v3841_v62 = vadd.f32 %v3840_v61, %v3801_v58  ;;  %v3804_v63 = vpop.f32.mrb[79].mxu0  ;;  %v3842_v0 = vpop.f32.mrb[77].mxu1 }
 0x1b8   :  { %v3843_v1 = vpop.f32.mrb[78].mxu1 }
 0x1b9   :  { %v3844_v2 = vpop.f32.mrb[79].mxu1 }
 0x1bc   :  { %v3880_v8 = vpop.f32.mrb[80].mxu0 }
 0x1bd   :  { %v3881_v3 = vadd.f32 %v3880_v8, %v3841_v62  ;;  %v3882_v4 = vpop.f32.mrb[81].mxu0 }
 0x1be   :  { %v3883_v5 = vpop.f32.mrb[82].mxu0  ;;  %v3920_v9 = vpop.f32.mrb[80].mxu1 }
 0x1bf   :  { %v3921_v6 = vadd.f32 %v3920_v9, %v3881_v3  ;;  %v3884_v7 = vpop.f32.mrb[83].mxu0  ;;  %v3922_v10 = vpop.f32.mrb[81].mxu1 }
 0x1c0   :  { %v3923_v11 = vpop.f32.mrb[82].mxu1 }
 0x1c1   :  { %v3924_v12 = vpop.f32.mrb[83].mxu1 }
 0x1c4   :  { %v3960_v13 = vpop.f32.mrb[84].mxu0 }
 0x1c5   :  { %v3961_v14 = vadd.f32 %v3960_v13, %v3921_v6  ;;  %v3962_v15 = vpop.f32.mrb[85].mxu0 }
 0x1c6   :  { %v3963_v16 = vpop.f32.mrb[86].mxu0  ;;  %v4000_v17 = vpop.f32.mrb[84].mxu1 }
 0x1c7   :  { %v4001_v18 = vadd.f32 %v4000_v17, %v3961_v14  ;;  %v3964_v19 = vpop.f32.mrb[87].mxu0  ;;  %v4002_v20 = vpop.f32.mrb[85].mxu1 }
 0x1c8   :  { %v4003_v21 = vpop.f32.mrb[86].mxu1 }
 0x1c9   :  { %v4004_v22 = vpop.f32.mrb[87].mxu1 }
 0x1cc   :  { %v4040_v23 = vpop.f32.mrb[88].mxu0 }
 0x1cd   :  { %v4041_v24 = vadd.f32 %v4040_v23, %v4001_v18  ;;  %v4042_v25 = vpop.f32.mrb[89].mxu0 }
 0x1ce   :  { %v4043_v26 = vpop.f32.mrb[90].mxu0  ;;  %v4080_v27 = vpop.f32.mrb[88].mxu1 }
 0x1cf   :  { %v4081_v28 = vadd.f32 %v4080_v27, %v4041_v24  ;;  %v4044_v29 = vpop.f32.mrb[91].mxu0  ;;  %v4082_v30 = vpop.f32.mrb[89].mxu1 }
 0x1d0   :  { %v4083_v31 = vpop.f32.mrb[90].mxu1 }
 0x1d1   :  { %v4084_v32 = vpop.f32.mrb[91].mxu1 }
 0x1d4   :  { %v4120_v33 = vpop.f32.mrb[92].mxu0 }
 0x1d5   :  { %v4121_v34 = vadd.f32 %v4120_v33, %v4081_v28  ;;  %v4122_v35 = vpop.f32.mrb[93].mxu0 }
 0x1d6   :  { %v4123_v36 = vpop.f32.mrb[94].mxu0  ;;  %v4160_v37 = vpop.f32.mrb[92].mxu1 }
 0x1d7   :  { %v4161_v38 = vadd.f32 %v4160_v37, %v4121_v34  ;;  %v4124_v39 = vpop.f32.mrb[95].mxu0  ;;  %v4162_v40 = vpop.f32.mrb[93].mxu1 }
 0x1d8   :  { %v4163_v41 = vpop.f32.mrb[94].mxu1 }
 0x1d9   :  { %v4164_v42 = vpop.f32.mrb[95].mxu1 }
 0x1dc   :  { %v4200_v43 = vpop.f32.mrb[96].mxu0 }
 0x1dd   :  { %v4201_v44 = vadd.f32 %v4200_v43, %v4161_v38  ;;  %v4202_v45 = vpop.f32.mrb[97].mxu0 }
 0x1de   :  { %v4203_v46 = vpop.f32.mrb[98].mxu0  ;;  %v4240_v47 = vpop.f32.mrb[96].mxu1 }
 0x1df   :  { %v4241_v48 = vadd.f32 %v4240_v47, %v4201_v44  ;;  %v4204_v49 = vpop.f32.mrb[99].mxu0  ;;  %v4242_v50 = vpop.f32.mrb[97].mxu1 }
 0x1e0   :  { %v4243_v51 = vpop.f32.mrb[98].mxu1 }
 0x1e1   :  { %v4244_v52 = vpop.f32.mrb[99].mxu1 }
 0x1e4   :  { %v4280_v53 = vpop.f32.mrb[100].mxu0 }
 0x1e5   :  { %v4281_v54 = vadd.f32 %v4280_v53, %v4241_v48  ;;  %v4282_v55 = vpop.f32.mrb[101].mxu0 }
 0x1e6   :  { %v4283_v56 = vpop.f32.mrb[102].mxu0  ;;  %v4320_v57 = vpop.f32.mrb[100].mxu1 }
 0x1e7   :  { %v4321_v58 = vadd.f32 %v4320_v57, %v4281_v54  ;;  %v4284_v59 = vpop.f32.mrb[103].mxu0  ;;  %v4322_v60 = vpop.f32.mrb[101].mxu1 }
 0x1e8   :  { %v4323_v61 = vpop.f32.mrb[102].mxu1 }
 0x1e9   :  { %v4324_v62 = vpop.f32.mrb[103].mxu1 }
 0x1ec   :  { %v4360_v63 = vpop.f32.mrb[104].mxu0 }
 0x1ed   :  { %v4361_v0 = vadd.f32 %v4360_v63, %v4321_v58  ;;  %v4362_v1 = vpop.f32.mrb[105].mxu0 }
 0x1ee   :  { %v4363_v2 = vpop.f32.mrb[106].mxu0  ;;  %v4400_v8 = vpop.f32.mrb[104].mxu1 }
 0x1ef   :  { %v4401_v3 = vadd.f32 %v4400_v8, %v4361_v0  ;;  %v4364_v4 = vpop.f32.mrb[107].mxu0  ;;  %v4402_v5 = vpop.f32.mrb[105].mxu1 }
 0x1f0   :  { %v4403_v9 = vpop.f32.mrb[106].mxu1 }
 0x1f1   :  { %v4404_v6 = vpop.f32.mrb[107].mxu1 }
 0x1f4   :  { %v4440_v7 = vpop.f32.mrb[108].mxu0 }
 0x1f5   :  { %v4441_v10 = vadd.f32 %v4440_v7, %v4401_v3  ;;  %v4442_v11 = vpop.f32.mrb[109].mxu0 }
 0x1f6   :  { %v4443_v12 = vpop.f32.mrb[110].mxu0  ;;  %v4480_v13 = vpop.f32.mrb[108].mxu1 }
 0x1f7   :  { %v4481_v14 = vadd.f32 %v4480_v13, %v4441_v10  ;;  %v4444_v15 = vpop.f32.mrb[111].mxu0  ;;  %v4482_v16 = vpop.f32.mrb[109].mxu1 }
 0x1f8   :  { %v4483_v17 = vpop.f32.mrb[110].mxu1 }
 0x1f9   :  { %v4484_v18 = vpop.f32.mrb[111].mxu1 }
 0x1fc   :  { %v4520_v19 = vpop.f32.mrb[112].mxu0 }
 0x1fd   :  { %v4521_v20 = vadd.f32 %v4520_v19, %v4481_v14  ;;  %v4522_v21 = vpop.f32.mrb[113].mxu0 }
 0x1fe   :  { %v4523_v22 = vpop.f32.mrb[114].mxu0  ;;  %v4560_v23 = vpop.f32.mrb[112].mxu1 }
 0x1ff   :  { %v4561_v24 = vadd.f32 %v4560_v23, %v4521_v20  ;;  %v4524_v25 = vpop.f32.mrb[115].mxu0  ;;  %v4562_v26 = vpop.f32.mrb[113].mxu1 }
 0x200   :  { %v4563_v27 = vpop.f32.mrb[114].mxu1 }
 0x201   :  { %v4564_v28 = vpop.f32.mrb[115].mxu1 }
 0x204   :  { %v4600_v29 = vpop.f32.mrb[116].mxu0 }
 0x205   :  { %v4601_v30 = vadd.f32 %v4600_v29, %v4561_v24  ;;  %v4602_v31 = vpop.f32.mrb[117].mxu0 }
 0x206   :  { %v4603_v32 = vpop.f32.mrb[118].mxu0  ;;  %v4640_v33 = vpop.f32.mrb[116].mxu1 }
 0x207   :  { %v4641_v34 = vadd.f32 %v4640_v33, %v4601_v30  ;;  %v4604_v35 = vpop.f32.mrb[119].mxu0  ;;  %v4642_v36 = vpop.f32.mrb[117].mxu1 }
 0x208   :  { %v4643_v37 = vpop.f32.mrb[118].mxu1 }
 0x209   :  { %v4644_v38 = vpop.f32.mrb[119].mxu1 }
 0x20c   :  { %v4680_v39 = vpop.f32.mrb[120].mxu0 }
 0x20d   :  { %v4681_v40 = vadd.f32 %v4680_v39, %v4641_v34  ;;  %v4682_v41 = vpop.f32.mrb[121].mxu0 }
 0x20e   :  { %v4683_v42 = vpop.f32.mrb[122].mxu0  ;;  %v4720_v43 = vpop.f32.mrb[120].mxu1 }
 0x20f   :  { %v4721_v44 = vadd.f32 %v4720_v43, %v4681_v40  ;;  %v4684_v45 = vpop.f32.mrb[123].mxu0  ;;  %v4722_v46 = vpop.f32.mrb[121].mxu1 }
 0x210   :  { %v4723_v47 = vpop.f32.mrb[122].mxu1 }
 0x211   :  { %v4724_v48 = vpop.f32.mrb[123].mxu1 }
 0x214   :  { %v4760_v49 = vpop.f32.mrb[124].mxu0 }
 0x215   :  { %v4761_v50 = vadd.f32 %v4760_v49, %v4721_v44  ;;  %v4762_v51 = vpop.f32.mrb[125].mxu0 }
 0x216   :  { %v4763_v52 = vpop.f32.mrb[126].mxu0  ;;  %v4800_v53 = vpop.f32.mrb[124].mxu1 }
 0x217   :  { %v4801_v54 = vadd.f32 %v4800_v53, %v4761_v50  ;;  %v4764_v55 = vpop.f32.mrb[127].mxu0  ;;  %v4802_v56 = vpop.f32.mrb[125].mxu1 }
 0x218   :  { %v4803_v57 = vpop.f32.mrb[126].mxu1 }
 0x219   :  { %v4804_v58 = vpop.f32.mrb[127].mxu1 }
 0x21c   :  { %v4840_v59 = vpop.f32.mrb[128].mxu0 }
 0x21d   :  { %v4841_v60 = vadd.f32 %v4840_v59, %v4801_v54  ;;  %v4842_v61 = vpop.f32.mrb[129].mxu0 }
 0x21e   :  { %v4843_v62 = vpop.f32.mrb[130].mxu0  ;;  %v4880_v63 = vpop.f32.mrb[128].mxu1 }
 0x21f   :  { %v4881_v0 = vadd.f32 %v4880_v63, %v4841_v60  ;;  %v4844_v1 = vpop.f32.mrb[131].mxu0  ;;  %v4882_v2 = vpop.f32.mrb[129].mxu1 }
 0x220   :  { %v4883_v8 = vpop.f32.mrb[130].mxu1 }
 0x221   :  { %v4884_v3 = vpop.f32.mrb[131].mxu1 }
 0x224   :  { %v4920_v4 = vpop.f32.mrb[132].mxu0 }
 0x225   :  { %v4921_v5 = vadd.f32 %v4920_v4, %v4881_v0  ;;  %v4922_v9 = vpop.f32.mrb[133].mxu0 }
 0x226   :  { %v4923_v6 = vpop.f32.mrb[134].mxu0  ;;  %v4960_v7 = vpop.f32.mrb[132].mxu1 }
 0x227   :  { %v4961_v10 = vadd.f32 %v4960_v7, %v4921_v5  ;;  %v4924_v11 = vpop.f32.mrb[135].mxu0  ;;  %v4962_v12 = vpop.f32.mrb[133].mxu1 }
 0x228   :  { %v4963_v13 = vpop.f32.mrb[134].mxu1 }
 0x229   :  { %v4964_v14 = vpop.f32.mrb[135].mxu1 }
 0x22c   :  { %v5000_v15 = vpop.f32.mrb[136].mxu0 }
 0x22d   :  { %v5001_v16 = vadd.f32 %v5000_v15, %v4961_v10  ;;  %v5002_v17 = vpop.f32.mrb[137].mxu0 }
 0x22e   :  { %v5003_v18 = vpop.f32.mrb[138].mxu0  ;;  %v5040_v19 = vpop.f32.mrb[136].mxu1 }
 0x22f   :  { %v5041_v20 = vadd.f32 %v5040_v19, %v5001_v16  ;;  %v5004_v21 = vpop.f32.mrb[139].mxu0  ;;  %v5042_v22 = vpop.f32.mrb[137].mxu1 }
 0x230   :  { %v5043_v23 = vpop.f32.mrb[138].mxu1  ;;  %v5570_v22 = vpop.permute.xlu0 %5569 }
 0x231   :  { %v5044_v24 = vpop.f32.mrb[139].mxu1 }
 0x234   :  { %v5080_v25 = vpop.f32.mrb[140].mxu0 }
 0x235   :  { %v5081_v26 = vadd.f32 %v5080_v25, %v5041_v20  ;;  %v5082_v27 = vpop.f32.mrb[141].mxu0 }
 0x236   :  { %v5083_v28 = vpop.f32.mrb[142].mxu0  ;;  %v5120_v29 = vpop.f32.mrb[140].mxu1 }
 0x237   :  { %v5121_v30 = vadd.f32 %v5120_v29, %v5081_v26  ;;  %v5084_v31 = vpop.f32.mrb[143].mxu0  ;;  %v5122_v32 = vpop.f32.mrb[141].mxu1 }
 0x238   :  { %v5123_v33 = vpop.f32.mrb[142].mxu1 }
 0x239   :  { %v5124_v34 = vpop.f32.mrb[143].mxu1 }
 0x23c   :  { %v5160_v35 = vpop.f32.mrb[144].mxu0 }
 0x23d   :  { %v5161_v36 = vadd.f32 %v5160_v35, %v5121_v30  ;;  %v5162_v37 = vpop.f32.mrb[145].mxu0 }
 0x23e   :  { %v5163_v38 = vpop.f32.mrb[146].mxu0  ;;  %v5200_v39 = vpop.f32.mrb[144].mxu1 }
 0x23f   :  { %v5201_v40 = vadd.f32 %v5200_v39, %v5161_v36  ;;  %v5164_v41 = vpop.f32.mrb[147].mxu0  ;;  %v5202_v42 = vpop.f32.mrb[145].mxu1 }
 0x240   :  { %v5203_v43 = vpop.f32.mrb[146].mxu1 }
 0x241   :  { %v5204_v44 = vpop.f32.mrb[147].mxu1 }
 0x244   :  { %v5240_v45 = vpop.f32.mrb[148].mxu0 }
 0x245   :  { %v5241_v46 = vadd.f32 %v5240_v45, %v5201_v40  ;;  %v5242_v47 = vpop.f32.mrb[149].mxu0 }
 0x246   :  { %v5243_v48 = vpop.f32.mrb[150].mxu0  ;;  %v5280_v49 = vpop.f32.mrb[148].mxu1 }
 0x247   :  { %v5281_v50 = vadd.f32 %v5280_v49, %v5241_v46  ;;  %v5244_v51 = vpop.f32.mrb[151].mxu0  ;;  %v5282_v52 = vpop.f32.mrb[149].mxu1 }
 0x248   :  { %v5283_v53 = vpop.f32.mrb[150].mxu1 }
 0x249   :  { %v5284_v54 = vpop.f32.mrb[151].mxu1 }
 0x24c   :  { %v5320_v55 = vpop.f32.mrb[152].mxu0 }
 0x24d   :  { %v5321_v56 = vadd.f32 %v5320_v55, %v5281_v50  ;;  %v5322_v57 = vpop.f32.mrb[153].mxu0 }
 0x24e   :  { %v5323_v58 = vpop.f32.mrb[154].mxu0  ;;  %v5360_v59 = vpop.f32.mrb[152].mxu1 }
 0x24f   :  { %v5361_v60 = vadd.f32 %v5360_v59, %v5321_v56  ;;  %v5324_v61 = vpop.f32.mrb[155].mxu0  ;;  %v5362_v62 = vpop.f32.mrb[153].mxu1 }
 0x250   :  { %v5363_v63 = vpop.f32.mrb[154].mxu1 }
 0x251   :  { %v5364_v0 = vpop.f32.mrb[155].mxu1 }
 0x254   :  { %v5400_v1 = vpop.f32.mrb[156].mxu0 }
 0x255   :  { %v5401_v2 = vadd.f32 %v5400_v1, %v5361_v60  ;;  %v5402_v8 = vpop.f32.mrb[157].mxu0 }
 0x256   :  { %v5403_v3 = vpop.f32.mrb[158].mxu0  ;;  %v5440_v4 = vpop.f32.mrb[156].mxu1 }
 0x257   :  { %v5441_v5 = vadd.f32 %v5440_v4, %v5401_v2  ;;  %v5404_v9 = vpop.f32.mrb[159].mxu0  ;;  %v5442_v6 = vpop.f32.mrb[157].mxu1 }
 0x258   :  { %v5443_v7 = vpop.f32.mrb[158].mxu1 }
 0x259   :  { %v5444_v10 = vpop.f32.mrb[159].mxu1 }
 0x25c   :  { %v5480_v11 = vpop.f32.mrb[160].mxu0 }
 0x25d   :  { %v5481_v12 = vadd.f32 %v5480_v11, %v5441_v5  ;;  %v5482_v13 = vpop.f32.mrb[161].mxu0 }
 0x25e   :  { %v5483_v14 = vpop.f32.mrb[162].mxu0  ;;  %v5520_v15 = vpop.f32.mrb[160].mxu1 }
 0x25f   :  { %v5521_v16 = vadd.f32 %v5520_v15, %v5481_v12  ;;  %v5484_v17 = vpop.f32.mrb[163].mxu0  ;;  %v5522_v18 = vpop.f32.mrb[161].mxu1 }
 0x260   :  { %v5523_v19 = vpop.f32.mrb[162].mxu1 }
 0x261   :  { %v5524_v20 = vpop.f32.mrb[163].mxu1 }
 0x264   :  { %v5560_v21 = vpop.f32.mrb[164].mxu0 }
 0x265   :  { %v5561_v23 = vadd.f32 %v5560_v21, %v5521_v16  ;;  %v5562_v24 = vpop.f32.mrb[165].mxu0 }
 0x266   :  { %v5563_v25 = vpop.f32.mrb[166].mxu0 }
 0x267   :  { %v5572_v26 = vadd.f32 %v5570_v22, %v5561_v23  ;;  %v5564_v27 = vpop.f32.mrb[167].mxu0 }
 0x269   :  { %5574 = vst.msk [vmem:[%s6022_s5] sm:$0xf] %vm5573_vm0, %v5572_v26 }
 0x26a   :  { %5579 = vsyncpa [#allocation3], 1 }
 0x26b   :  { %5580 = vsyncpa [#allocation5], 1 }

</bundles_post_ra>
